<compile_context>
chip_gen: v7x
topology: tpu7x:2x2x1
jax: 0.10.0
libtpu: 0.0.40
codegen_flags: <defaults>
</compile_context>

<pallas_src>
import functools

import jax
import jax.numpy as jnp
import numpy as np
from jax.experimental import pallas as pl
from jax.experimental.pallas import tpu as pltpu

_BN_EPS = 1e-5
# Fused-path guard: (input + output) x double-buffer of the whole (B, C, HW) f32 slab,
# kept well under the smallest default scoped-VMEM limit (16 MiB on v5e).
_FUSED_VMEM_BUDGET = 12 << 20
_FUSED_MAX_BATCH = 16          # fused kernel statically unrolls the batch loop


# ---------------------------------------------------------------------------
# Fused path: pool -> conv1d+sigmoid -> BN fold -> FMA in ONE kernel (NCHW-native)
# ---------------------------------------------------------------------------
def _eca_fused_kernel(w_ref, x_ref, gamma_ref, beta_ref, out_ref):
    # w_ref     : (3,)        conv1d taps in SMEM
    # x_ref     : (B, C, HW)  whole slab in VMEM (C on sublanes, HW on lanes)
    # gamma_ref : (C, 1)      BN weight
    # beta_ref  : (C, 1)      BN bias
    # out_ref   : (B, C, HW)
    B, C, HW = x_ref.shape
    inv_hw = 1.0 / float(HW)
    w0, w1, w2 = w_ref[0], w_ref[1], w_ref[2]
    cidx = jax.lax.broadcasted_iota(jnp.int32, (C, 1), 0)

    # Per-batch statically unrolled loop (fused path is only taken for small B).
    pooled_l, q_l, a_l = [], [], []
    for b in range(B):
        xb = x_ref[b].astype(jnp.float32)                         # (C, HW)
        pooled = jnp.sum(xb, axis=1, keepdims=True) * inv_hw      # (C, 1) global avg pool
        xc = xb - pooled
        q = jnp.sum(xc * xc, axis=1, keepdims=True)               # centered sum of squares
        # conv1d(k=3, pad=1, bias=False) over the channel (sublane) axis, zero padded:
        #   y[c] = w0*p[c-1] + w1*p[c] + w2*p[c+1]
        prev = jnp.where(cidx == 0, 0.0, pltpu.roll(pooled, shift=1, axis=0))
        nxt = jnp.where(cidx == C - 1, 0.0, pltpu.roll(pooled, shift=C - 1, axis=0))
        a = jax.nn.sigmoid(w0 * prev + w1 * pooled + w2 * nxt)    # (C, 1) attention
        pooled_l.append(pooled)
        q_l.append(q)
        a_l.append(a)

    # Training-mode BatchNorm statistics of z = x * a (per channel, over B*HW):
    #   mean   = (1/B)        sum_b a_b * pooled_b
    #   E[z^2] = (1/(B*HW))   sum_b a_b^2 * q_b   +   (1/B) sum_b (a_b * pooled_b)^2
    inv_b = 1.0 / float(B)
    inv_n = 1.0 / float(B * HW)
    am = [a_l[b] * pooled_l[b] for b in range(B)]
    mean = sum(am) * inv_b                                        # (C, 1)
    ez2 = (sum(a_l[b] * a_l[b] * q_l[b] for b in range(B)) * inv_n
           + sum(v * v for v in am) * inv_b)
    var = jnp.maximum(ez2 - mean * mean, 0.0)                     # biased variance
    inv_std = jax.lax.rsqrt(var + _BN_EPS)
    gi = gamma_ref[...].astype(jnp.float32) * inv_std             # (C, 1)
    shift = beta_ref[...].astype(jnp.float32) - mean * gi         # (C, 1)

    # out = x * (a * gamma * inv_std) + (beta - mean * gamma * inv_std)
    for b in range(B):
        xb = x_ref[b].astype(jnp.float32)
        out_ref[b] = (xb * (a_l[b] * gi) + shift).astype(out_ref.dtype)


def _eca_fused(x, conv_w, gamma, beta):
    B, C, HW = x.shape
    return pl.pallas_call(
        _eca_fused_kernel,
        out_shape=jax.ShapeDtypeStruct((B, C, HW), x.dtype),
        grid=(1,),
        in_specs=[
            pl.BlockSpec(memory_space=pltpu.MemorySpace.SMEM),        # conv weights (3,)
            pl.BlockSpec((B, C, HW), lambda i: (0, 0, 0)),
            pl.BlockSpec((C, 1), lambda i: (0, 0)),
            pl.BlockSpec((C, 1), lambda i: (0, 0)),
        ],
        out_specs=pl.BlockSpec((B, C, HW), lambda i: (0, 0, 0)),
        compiler_params=pltpu.CompilerParams(dimension_semantics=("arbitrary",)),
    )(conv_w, x,
      gamma.reshape(C, 1).astype(jnp.float32),
      beta.reshape(C, 1).astype(jnp.float32))


# ---------------------------------------------------------------------------
# Tiled path (large HW): pool-sum reduction + plain-JAX fold + streaming FMA
# ---------------------------------------------------------------------------
def _pick_tile_hw(hw, target=2048):
    """HW tile: a multiple of 128 (lane-dense) that divides HW if one exists, else
    `target` with a masked ragged tail.  Never returns a tile larger than `target`
    (fixes the old fallback that could blow VMEM for awkward HW factorizations)."""
    if hw <= target:
        return hw                       # single full-extent block (always legal)
    for t in range(target, 127, -128):
        if hw % t == 0:
            return t
    return target                       # ragged last tile, masked in the pool pass


def _eca_pool_kernel(x_ref, sum_ref, sumsq_ref, *, hw, ragged):
    # x_ref: (1, C, T).  Accumulators (1, C, 1) resident across the HW grid axis.
    t = pl.program_id(1)
    x = x_ref[...].astype(jnp.float32)
    if ragged:
        tile = x.shape[2]
        col = jax.lax.broadcasted_iota(jnp.int32, x.shape, 2) + t * tile
        x = jnp.where(col < hw, x, 0.0)           # mask the out-of-bounds tail
    ps = jnp.sum(x, axis=2, keepdims=True)        # (1, C, 1)
    ps2 = jnp.sum(x * x, axis=2, keepdims=True)   # (1, C, 1)

    @pl.when(t == 0)
    def _():
        sum_ref[...] = jnp.zeros_like(sum_ref)
        sumsq_ref[...] = jnp.zeros_like(sumsq_ref)

    sum_ref[...] += ps
    sumsq_ref[...] += ps2


def _eca_apply_kernel(x_ref, scale_ref, shift_ref, out_ref):
    # Pure streaming FMA: out = x * scale[b, c] + shift[c]   (lane-dense tiles)
    x = x_ref[...].astype(jnp.float32)
    out_ref[...] = (x * scale_ref[...] + shift_ref[...]).astype(out_ref.dtype)


def _eca_tiled(x, conv_w, gamma, beta, tile_hw=None):
    B, C, HW = x.shape
    T = tile_hw if tile_hw is not None else _pick_tile_hw(HW)
    n_t = (HW + T - 1) // T
    ragged = (HW % T) != 0

    # --- Pass 1: per-(batch, channel) sum(x), sum(x^2) over HW (tiled reduction) ---
    sum_x, sumsq_x = pl.pallas_call(
        functools.partial(_eca_pool_kernel, hw=HW, ragged=ragged),
        out_shape=(jax.ShapeDtypeStruct((B, C, 1), jnp.float32),
                   jax.ShapeDtypeStruct((B, C, 1), jnp.float32)),
        grid=(B, n_t),
        in_specs=[pl.BlockSpec((1, C, T), lambda b, t: (b, 0, t))],
        out_specs=(pl.BlockSpec((1, C, 1), lambda b, t: (b, 0, 0)),
                   pl.BlockSpec((1, C, 1), lambda b, t: (b, 0, 0))),
        compiler_params=pltpu.CompilerParams(
            dimension_semantics=("parallel", "arbitrary")),
    )(x)

    # --- Pass 2 (plain JAX on (B, C)-sized vectors; no extra kernel launch): ---
    # conv1d(k=3, pad=1) over channels + sigmoid, BN batch stats from the sums,
    # folded into per-(batch, channel) scale and per-channel shift.
    s = sum_x[:, :, 0]                                            # (B, C)
    s2 = sumsq_x[:, :, 0]
    pooled = s / HW
    padded = jnp.pad(pooled, ((0, 0), (1, 1)))
    y = (conv_w[0] * padded[:, :-2] + conv_w[1] * padded[:, 1:-1]
         + conv_w[2] * padded[:, 2:])
    a = jax.nn.sigmoid(y)                                         # (B, C)
    n = float(B * HW)
    mean = jnp.sum(a * s, axis=0) / n                             # (C,)
    # NOTE: single-pass E[z^2]-E[z]^2; can lose precision when |mean| >> std at scale.
    ez2 = jnp.sum(a * a * s2, axis=0) / n
    var = jnp.maximum(ez2 - mean * mean, 0.0)
    inv_std = jax.lax.rsqrt(var + _BN_EPS)
    gi = gamma.astype(jnp.float32) * inv_std
    scale = (a * gi)[:, :, None]                                  # (B, C, 1)
    shift = (beta.astype(jnp.float32) - mean * gi)[None, :, None]  # (1, C, 1)

    # --- Pass 3: fully tiled, double-buffered, both axes parallel ---
    out = pl.pallas_call(
        _eca_apply_kernel,
        out_shape=jax.ShapeDtypeStruct((B, C, HW), x.dtype),
        grid=(B, n_t),
        in_specs=[pl.BlockSpec((1, C, T), lambda b, t: (b, 0, t)),
                  pl.BlockSpec((1, C, 1), lambda b, t: (b, 0, 0)),
                  pl.BlockSpec((1, C, 1), lambda b, t: (0, 0, 0))],
        out_specs=pl.BlockSpec((1, C, T), lambda b, t: (b, 0, t)),
        compiler_params=pltpu.CompilerParams(
            dimension_semantics=("parallel", "parallel")),
    )(x, scale, shift)
    return out


# ---------------------------------------------------------------------------
# Public wrapper (NCHW, PyTorch layout)
# ---------------------------------------------------------------------------
def eca_forward(x_nchw, conv_w, gamma, beta, *, force_tiled=False, tile_hw=None):
    """ECA forward for NCHW input, training-mode BatchNorm2d statistics.

    NCHW-native: x is only viewed as (B, C, H*W) -- a free reshape (C on sublanes,
    HW on the 128-wide lane axis) -- so no layout transposes / extra HBM traffic.
    """
    B, C, H, W = x_nchw.shape
    HW = H * W
    x = x_nchw.reshape(B, C, HW)
    conv_w = jnp.asarray(conv_w).reshape(-1).astype(jnp.float32)

    slab_bytes = B * C * HW * 4                       # f32 compute slab
    use_fused = (not force_tiled
                 and B <= _FUSED_MAX_BATCH
                 and 4 * slab_bytes <= _FUSED_VMEM_BUDGET)
    if use_fused:
        out = _eca_fused(x, conv_w, gamma, beta)
    else:
        out = _eca_tiled(x, conv_w, gamma, beta, tile_hw=tile_hw)
    return out.reshape(B, C, H, W)


# ---------------------------------------------------------------------------
# Pure-JAX reference (mirrors the PyTorch forward, training-mode BN)
# ---------------------------------------------------------------------------
def eca_reference(x, conv_w, gamma, beta):
    pooled = jnp.mean(x, axis=(2, 3))                               # (B, C)
    padded = jnp.pad(pooled, ((0, 0), (1, 1)))
    y = (conv_w[0] * padded[:, :-2]
         + conv_w[1] * padded[:, 1:-1]
         + conv_w[2] * padded[:, 2:])
    a = jax.nn.sigmoid(y)[:, :, None, None]
    z = x * a
    mean = jnp.mean(z, axis=(0, 2, 3), keepdims=True)
    var = jnp.mean((z - mean) ** 2, axis=(0, 2, 3), keepdims=True)
    return ((z - mean) / jnp.sqrt(var + _BN_EPS)
            * gamma[None, :, None, None] + beta[None, :, None, None])


if __name__ == "__main__":
    key = jax.random.PRNGKey(0)
    kx, kw, kg, kb, kx2 = jax.random.split(key, 5)

    # BatchNorm2d(128) in the module fixes C = 128; grasp-model feature maps are 8x8.
    B, C, H, W = 2, 128, 8, 8
    x = jax.random.normal(kx, (B, C, H, W), dtype=jnp.float32)

    # Conv1d(1, 1, 3, bias=False) weight: torch shape (1, 1, 3) -> (3,) here.
    bound = float(np.sqrt(1.0 / 3.0))                 # kaiming-uniform bound, fan_in=3
    conv_w = jax.random.uniform(kw, (3,), minval=-bound, maxval=bound, dtype=jnp.float32)

    # BatchNorm2d(128) affine params (non-trivial values to exercise the folding).
    gamma = jax.random.uniform(kg, (C,), minval=0.5, maxval=1.5, dtype=jnp.float32)
    beta = 0.1 * jax.random.normal(kb, (C,), dtype=jnp.float32)

    ref = eca_reference(x, conv_w, gamma, beta)

    # 1) Fused single-kernel path (the real model shape: whole slab VMEM-resident).
    out = jax.block_until_ready(eca_forward(x, conv_w, gamma, beta))
    np.testing.assert_allclose(np.asarray(out), np.asarray(ref), rtol=1e-4, atol=1e-5)

    # 2) Tiled path, single full-extent HW block.
    out_t = jax.block_until_ready(eca_forward(x, conv_w, gamma, beta, force_tiled=True))
    np.testing.assert_allclose(np.asarray(out_t), np.asarray(ref), rtol=1e-4, atol=1e-5)

    # 3) Tiled path, multi-tile grid with a masked ragged tail (HW=600, T=256).
    H2, W2 = 12, 50
    x2 = jax.random.normal(kx2, (B, C, H2, W2), dtype=jnp.float32)
    out2 = jax.block_until_ready(
        eca_forward(x2, conv_w, gamma, beta, force_tiled=True, tile_hw=256))
    np.testing.assert_allclose(np.asarray(out2),
                               np.asarray(eca_reference(x2, conv_w, gamma, beta)),
                               rtol=1e-4, atol=1e-5)

    print("KERNEL_OK")
</pallas_src>

<mosaic_0001>
module attributes {stable_mosaic.version = 11 : i64} {
  func.func @_eca_fused_kernel(%arg0: i32, %arg1: memref<3xf32, #tpu.memory_space<smem>>, %arg2: memref<2x128x64xf32, #tpu.memory_space<vmem>>, %arg3: memref<128x1xf32, #tpu.memory_space<vmem>>, %arg4: memref<128x1xf32, #tpu.memory_space<vmem>>, %arg5: memref<2x128x64xf32, #tpu.memory_space<vmem>>) attributes {dimension_semantics = [#tpu.dimension_semantics<arbitrary>], iteration_bounds = array<i64: 1>, scalar_prefetch = 0 : i64, scratch_operands = 0 : i64, tpu.core_type = #tpu.core_type<tc>, window_params = [{transform_indices = @transform_0, window_bounds = array<i64: 3>}, {pipeline_mode = #tpu.pipeline_mode<synchronous>, transform_indices = @transform_1, window_bounds = array<i64: 2, 128, 64>}, {pipeline_mode = #tpu.pipeline_mode<synchronous>, transform_indices = @transform_2, window_bounds = array<i64: 128, 1>}, {pipeline_mode = #tpu.pipeline_mode<synchronous>, transform_indices = @transform_3, window_bounds = array<i64: 128, 1>}, {pipeline_mode = #tpu.pipeline_mode<synchronous>, transform_indices = @transform_4, window_bounds = array<i64: 2, 128, 64>}]} {
    %c0 = arith.constant 0 : index
    %0 = memref.load %arg1[%c0] : memref<3xf32, #tpu.memory_space<smem>>
    %c1 = arith.constant 1 : index
    %1 = memref.load %arg1[%c1] : memref<3xf32, #tpu.memory_space<smem>>
    %c2 = arith.constant 2 : index
    %2 = memref.load %arg1[%c2] : memref<3xf32, #tpu.memory_space<smem>>
    %3 = tpu.iota {dimensions = array<i32: 0>} : vector<128x1xi32>
    %c0_0 = arith.constant 0 : index
    %c0_1 = arith.constant 0 : index
    %c0_2 = arith.constant 0 : index
    %4 = vector.load %arg2[%c0_0, %c0_1, %c0_2] : memref<2x128x64xf32, #tpu.memory_space<vmem>>, vector<1x128x64xf32>
    %5 = vector.shape_cast %4 : vector<1x128x64xf32> to vector<128x64xf32>
    %cst = arith.constant dense<0.000000e+00> : vector<128xf32>
    %6 = vector.multi_reduction <add>, %5, %cst [1] : vector<128x64xf32> to vector<128xf32>
    %7 = vector.shape_cast %6 : vector<128xf32> to vector<128x1xf32>
    %cst_3 = arith.constant 1.562500e-02 : f32
    %8 = vector.broadcast %cst_3 : f32 to vector<128x1xf32>
    %9 = arith.mulf %7, %8 : vector<128x1xf32>
    %10 = vector.broadcast %9 : vector<128x1xf32> to vector<128x64xf32>
    %11 = arith.subf %5, %10 : vector<128x64xf32>
    %12 = arith.mulf %11, %11 : vector<128x64xf32>
    %cst_4 = arith.constant dense<0.000000e+00> : vector<128xf32>
    %13 = vector.multi_reduction <add>, %12, %cst_4 [1] : vector<128x64xf32> to vector<128xf32>
    %14 = vector.shape_cast %13 : vector<128xf32> to vector<128x1xf32>
    %c0_i32 = arith.constant 0 : i32
    %15 = vector.broadcast %c0_i32 : i32 to vector<128x1xi32>
    %16 = arith.cmpi eq, %3, %15 : vector<128x1xi32>
    %c1_i32 = arith.constant 1 : i32
    %17 = tpu.dynamic_rotate %9 by %c1_i32 dim 0 : vector<128x1xf32>, i32 -> vector<128x1xf32>
    %cst_5 = arith.constant 0.000000e+00 : f32
    %18 = vector.broadcast %cst_5 : f32 to vector<128x1xf32>
    %19 = arith.select %16, %18, %17 : vector<128x1xi1>, vector<128x1xf32>
    %c127_i32 = arith.constant 127 : i32
    %20 = vector.broadcast %c127_i32 : i32 to vector<128x1xi32>
    %21 = arith.cmpi eq, %3, %20 : vector<128x1xi32>
    %c127_i32_6 = arith.constant 127 : i32
    %22 = tpu.dynamic_rotate %9 by %c127_i32_6 dim 0 : vector<128x1xf32>, i32 -> vector<128x1xf32>
    %cst_7 = arith.constant 0.000000e+00 : f32
    %23 = vector.broadcast %cst_7 : f32 to vector<128x1xf32>
    %24 = arith.select %21, %23, %22 : vector<128x1xi1>, vector<128x1xf32>
    %25 = vector.broadcast %0 : f32 to vector<128x1xf32>
    %26 = arith.mulf %25, %19 : vector<128x1xf32>
    %27 = vector.broadcast %1 : f32 to vector<128x1xf32>
    %28 = arith.mulf %27, %9 : vector<128x1xf32>
    %29 = arith.addf %26, %28 : vector<128x1xf32>
    %30 = vector.broadcast %2 : f32 to vector<128x1xf32>
    %31 = arith.mulf %30, %24 : vector<128x1xf32>
    %32 = arith.addf %29, %31 : vector<128x1xf32>
    %33 = arith.negf %32 : vector<128x1xf32>
    %34 = math.exp %33 : vector<128x1xf32>
    %cst_8 = arith.constant 1.000000e+00 : f32
    %35 = vector.broadcast %cst_8 : f32 to vector<128x1xf32>
    %36 = arith.addf %35, %34 : vector<128x1xf32>
    %37 = arith.divf %35, %36 : vector<128x1xf32>
    %c1_9 = arith.constant 1 : index
    %c0_10 = arith.constant 0 : index
    %c0_11 = arith.constant 0 : index
    %38 = vector.load %arg2[%c1_9, %c0_10, %c0_11] : memref<2x128x64xf32, #tpu.memory_space<vmem>>, vector<1x128x64xf32>
    %39 = vector.shape_cast %38 : vector<1x128x64xf32> to vector<128x64xf32>
    %cst_12 = arith.constant dense<0.000000e+00> : vector<128xf32>
    %40 = vector.multi_reduction <add>, %39, %cst_12 [1] : vector<128x64xf32> to vector<128xf32>
    %41 = vector.shape_cast %40 : vector<128xf32> to vector<128x1xf32>
    %cst_13 = arith.constant 1.562500e-02 : f32
    %42 = vector.broadcast %cst_13 : f32 to vector<128x1xf32>
    %43 = arith.mulf %41, %42 : vector<128x1xf32>
    %44 = vector.broadcast %43 : vector<128x1xf32> to vector<128x64xf32>
    %45 = arith.subf %39, %44 : vector<128x64xf32>
    %46 = arith.mulf %45, %45 : vector<128x64xf32>
    %cst_14 = arith.constant dense<0.000000e+00> : vector<128xf32>
    %47 = vector.multi_reduction <add>, %46, %cst_14 [1] : vector<128x64xf32> to vector<128xf32>
    %48 = vector.shape_cast %47 : vector<128xf32> to vector<128x1xf32>
    %c0_i32_15 = arith.constant 0 : i32
    %49 = vector.broadcast %c0_i32_15 : i32 to vector<128x1xi32>
    %50 = arith.cmpi eq, %3, %49 : vector<128x1xi32>
    %c1_i32_16 = arith.constant 1 : i32
    %51 = tpu.dynamic_rotate %43 by %c1_i32_16 dim 0 : vector<128x1xf32>, i32 -> vector<128x1xf32>
    %cst_17 = arith.constant 0.000000e+00 : f32
    %52 = vector.broadcast %cst_17 : f32 to vector<128x1xf32>
    %53 = arith.select %50, %52, %51 : vector<128x1xi1>, vector<128x1xf32>
    %c127_i32_18 = arith.constant 127 : i32
    %54 = vector.broadcast %c127_i32_18 : i32 to vector<128x1xi32>
    %55 = arith.cmpi eq, %3, %54 : vector<128x1xi32>
    %c127_i32_19 = arith.constant 127 : i32
    %56 = tpu.dynamic_rotate %43 by %c127_i32_19 dim 0 : vector<128x1xf32>, i32 -> vector<128x1xf32>
    %cst_20 = arith.constant 0.000000e+00 : f32
    %57 = vector.broadcast %cst_20 : f32 to vector<128x1xf32>
    %58 = arith.select %55, %57, %56 : vector<128x1xi1>, vector<128x1xf32>
    %59 = vector.broadcast %0 : f32 to vector<128x1xf32>
    %60 = arith.mulf %59, %53 : vector<128x1xf32>
    %61 = vector.broadcast %1 : f32 to vector<128x1xf32>
    %62 = arith.mulf %61, %43 : vector<128x1xf32>
    %63 = arith.addf %60, %62 : vector<128x1xf32>
    %64 = vector.broadcast %2 : f32 to vector<128x1xf32>
    %65 = arith.mulf %64, %58 : vector<128x1xf32>
    %66 = arith.addf %63, %65 : vector<128x1xf32>
    %67 = arith.negf %66 : vector<128x1xf32>
    %68 = math.exp %67 : vector<128x1xf32>
    %cst_21 = arith.constant 1.000000e+00 : f32
    %69 = vector.broadcast %cst_21 : f32 to vector<128x1xf32>
    %70 = arith.addf %69, %68 : vector<128x1xf32>
    %71 = arith.divf %69, %70 : vector<128x1xf32>
    %72 = arith.mulf %37, %9 : vector<128x1xf32>
    %73 = arith.mulf %71, %43 : vector<128x1xf32>
    %cst_22 = arith.constant 0.000000e+00 : f32
    %74 = vector.broadcast %cst_22 : f32 to vector<128x1xf32>
    %75 = arith.addf %74, %72 : vector<128x1xf32>
    %76 = arith.addf %75, %73 : vector<128x1xf32>
    %cst_23 = arith.constant 5.000000e-01 : f32
    %77 = vector.broadcast %cst_23 : f32 to vector<128x1xf32>
    %78 = arith.mulf %76, %77 : vector<128x1xf32>
    %79 = arith.mulf %37, %37 : vector<128x1xf32>
    %80 = arith.mulf %79, %14 : vector<128x1xf32>
    %cst_24 = arith.constant 0.000000e+00 : f32
    %81 = vector.broadcast %cst_24 : f32 to vector<128x1xf32>
    %82 = arith.addf %81, %80 : vector<128x1xf32>
    %83 = arith.mulf %71, %71 : vector<128x1xf32>
    %84 = arith.mulf %83, %48 : vector<128x1xf32>
    %85 = arith.addf %82, %84 : vector<128x1xf32>
    %cst_25 = arith.constant 7.812500e-03 : f32
    %86 = vector.broadcast %cst_25 : f32 to vector<128x1xf32>
    %87 = arith.mulf %85, %86 : vector<128x1xf32>
    %88 = arith.mulf %72, %72 : vector<128x1xf32>
    %cst_26 = arith.constant 0.000000e+00 : f32
    %89 = vector.broadcast %cst_26 : f32 to vector<128x1xf32>
    %90 = arith.addf %89, %88 : vector<128x1xf32>
    %91 = arith.mulf %73, %73 : vector<128x1xf32>
    %92 = arith.addf %90, %91 : vector<128x1xf32>
    %cst_27 = arith.constant 5.000000e-01 : f32
    %93 = vector.broadcast %cst_27 : f32 to vector<128x1xf32>
    %94 = arith.mulf %92, %93 : vector<128x1xf32>
    %95 = arith.addf %87, %94 : vector<128x1xf32>
    %96 = arith.mulf %78, %78 : vector<128x1xf32>
    %97 = arith.subf %95, %96 : vector<128x1xf32>
    %cst_28 = arith.constant 0.000000e+00 : f32
    %98 = vector.broadcast %cst_28 : f32 to vector<128x1xf32>
    %99 = arith.maximumf %97, %98 : vector<128x1xf32>
    %cst_29 = arith.constant 9.99999974E-6 : f32
    %100 = vector.broadcast %cst_29 : f32 to vector<128x1xf32>
    %101 = arith.addf %99, %100 : vector<128x1xf32>
    %102 = math.rsqrt %101 : vector<128x1xf32>
    %c0_30 = arith.constant 0 : index
    %c0_31 = arith.constant 0 : index
    %103 = vector.load %arg3[%c0_30, %c0_31] : memref<128x1xf32, #tpu.memory_space<vmem>>, vector<128x1xf32>
    %104 = arith.mulf %103, %102 : vector<128x1xf32>
    %c0_32 = arith.constant 0 : index
    %c0_33 = arith.constant 0 : index
    %105 = vector.load %arg4[%c0_32, %c0_33] : memref<128x1xf32, #tpu.memory_space<vmem>>, vector<128x1xf32>
    %106 = arith.mulf %78, %104 : vector<128x1xf32>
    %107 = arith.subf %105, %106 : vector<128x1xf32>
    %c0_34 = arith.constant 0 : index
    %c0_35 = arith.constant 0 : index
    %c0_36 = arith.constant 0 : index
    %108 = vector.load %arg2[%c0_34, %c0_35, %c0_36] : memref<2x128x64xf32, #tpu.memory_space<vmem>>, vector<1x128x64xf32>
    %109 = vector.shape_cast %108 : vector<1x128x64xf32> to vector<128x64xf32>
    %110 = arith.mulf %37, %104 : vector<128x1xf32>
    %111 = vector.broadcast %110 : vector<128x1xf32> to vector<128x64xf32>
    %112 = arith.mulf %109, %111 : vector<128x64xf32>
    %113 = vector.broadcast %107 : vector<128x1xf32> to vector<128x64xf32>
    %114 = arith.addf %112, %113 : vector<128x64xf32>
    %c0_37 = arith.constant 0 : index
    %c0_38 = arith.constant 0 : index
    %c0_39 = arith.constant 0 : index
    %115 = vector.load %arg5[%c0_37, %c0_38, %c0_39] : memref<2x128x64xf32, #tpu.memory_space<vmem>>, vector<1x128x64xf32>
    %116 = vector.shape_cast %115 : vector<1x128x64xf32> to vector<128x64xf32>
    %117 = vector.shape_cast %114 : vector<128x64xf32> to vector<1x128x64xf32>
    tpu.vector_store %arg5[%c0_37, %c0_38, %c0_39], %117 {strides = array<i32>} : memref<2x128x64xf32, #tpu.memory_space<vmem>>, vector<1x128x64xf32>,
    %c1_40 = arith.constant 1 : index
    %c0_41 = arith.constant 0 : index
    %c0_42 = arith.constant 0 : index
    %118 = vector.load %arg2[%c1_40, %c0_41, %c0_42] : memref<2x128x64xf32, #tpu.memory_space<vmem>>, vector<1x128x64xf32>
    %119 = vector.shape_cast %118 : vector<1x128x64xf32> to vector<128x64xf32>
    %120 = arith.mulf %71, %104 : vector<128x1xf32>
    %121 = vector.broadcast %120 : vector<128x1xf32> to vector<128x64xf32>
    %122 = arith.mulf %119, %121 : vector<128x64xf32>
    %123 = vector.broadcast %107 : vector<128x1xf32> to vector<128x64xf32>
    %124 = arith.addf %122, %123 : vector<128x64xf32>
    %c1_43 = arith.constant 1 : index
    %c0_44 = arith.constant 0 : index
    %c0_45 = arith.constant 0 : index
    %125 = vector.load %arg5[%c1_43, %c0_44, %c0_45] : memref<2x128x64xf32, #tpu.memory_space<vmem>>, vector<1x128x64xf32>
    %126 = vector.shape_cast %125 : vector<1x128x64xf32> to vector<128x64xf32>
    %127 = vector.shape_cast %124 : vector<128x64xf32> to vector<1x128x64xf32>
    tpu.vector_store %arg5[%c1_43, %c0_44, %c0_45], %127 {strides = array<i32>} : memref<2x128x64xf32, #tpu.memory_space<vmem>>, vector<1x128x64xf32>,
    return
  }
  func.func @transform_0(%arg0: i32) -> i32 {
    %c0_i32 = arith.constant 0 : i32
    %c0_i32_0 = arith.constant 0 : i32
    return %c0_i32 : i32
  }
  func.func @transform_1(%arg0: i32) -> (i32, i32, i32) {
    %c0_i32 = arith.constant 0 : i32
    %c0_i32_0 = arith.constant 0 : i32
    %c0_i32_1 = arith.constant 0 : i32
    %c0_i32_2 = arith.constant 0 : i32
    return %c0_i32, %c0_i32_0, %c0_i32_1 : i32, i32, i32
  }
  func.func @transform_2(%arg0: i32) -> (i32, i32) {
    %c0_i32 = arith.constant 0 : i32
    %c0_i32_0 = arith.constant 0 : i32
    %c0_i32_1 = arith.constant 0 : i32
    return %c0_i32, %c0_i32_0 : i32, i32
  }
  func.func @transform_3(%arg0: i32) -> (i32, i32) {
    %c0_i32 = arith.constant 0 : i32
    %c0_i32_0 = arith.constant 0 : i32
    %c0_i32_1 = arith.constant 0 : i32
    return %c0_i32, %c0_i32_0 : i32, i32
  }
  func.func @transform_4(%arg0: i32) -> (i32, i32, i32) {
    %c0_i32 = arith.constant 0 : i32
    %c0_i32_0 = arith.constant 0 : i32
    %c0_i32_1 = arith.constant 0 : i32
    %c0_i32_2 = arith.constant 0 : i32
    return %c0_i32, %c0_i32_0, %c0_i32_1 : i32, i32, i32
  }
}

</mosaic_0001>

<bundles_post_ra>
// kernel: tpu_custom_call.1
= control target key start
LH: loop header
LB: loop body
LE: loop exit
PB: predicated region body
PF: predicated region fallthrough
CT: control target
= control target key end

     0   :  { %9 = vsyncpa [#allocation3], 0  ;;  %s3944_s0 = inlined_call_operand.vmem [shape: f32[3], index: 0, kind: input, shape index: {}]   ;;  %s3945_s1 = inlined_call_operand.vmem [shape: f32[2,128,64], index: 1, kind: input, shape index: {}]   ;;  %s3946_s2 = inlined_call_operand.vmem [shape: f32[128,1], index: 2, kind: input, shape index: {}]   ;;  %s3947_s3 = inlined_call_operand.vmem [shape: f32[128,1], index: 3, kind: input, shape index: {}]   ;;  %s3948_s4 = inlined_call_operand.vmem [shape: f32[2,128,64], index: 4, kind: output, shape index: {}]  }
   0x1   :  { %s16_s17 = sshll.u32 %s3944_s0, 4  ;;  %s17_s17 = int_to_ptr.vmem [resolvable:$true] %s16_s17 }
   0x2   :  { %s2053_s18 = scalar_lea.vmem %s17_s17, 16  ;;  %p2058_p1 = scmp.lt.s32.totalorder %s17_s17, %s17_s17 }
   0x3   :  { %p2054_p0 = scmp.ne.s32.totalorder %s17_s17, %s2053_s18  ;;  %p2059_p2 = scmp.lt.s32.totalorder %s2053_s18, %s2053_s18 }
   0x5   :  { %p2060_p3 = por %p2059_p2, %p2058_p1 }
   0x7   :  { %p2061_p4 = pnand %p2060_p3, %p2054_p0 }
   0x9   :  { %2064 = shalt.err (!%p2061_p4)
}
   0xa   :  { %s2067_s19 = smov [#allocation2]  }
   0xb   :  { %19 = dma.vmem_to_smem %s17_s17, 16, %s2067_s19, [#allocation3]  }
   0xc   :  { %2065 = dma.done.wait [#allocation3], 16  }
   0xd   :  { %2066 = vsyncadd [#allocation3], 4294967280 }
   0xe   :  { %29 = sfence }
   0xf   :  { %v2100_v0 = vld [vmem:[%s3945_s1 + $0x10] sm:$0xff]  ;;  %vm66_vm0 = vcmask 523264   ;;  %v2105_v1 = vld [vmem:[%s3945_s1] sm:$0xff]  ;;  %v2110_v2 = vld [vmem:[%s3945_s1 + $0x18] sm:$0xff]  ;;  %s30_s29 = sld [smem:[#allocation2]]  ;;  %s1791_s30 = sld [smem:[#allocation2 + $0x1]] }
  0x10   :  { %v73_v3 = vsel %vm66_vm0, %v2100_v0, 0.0  ;;  %v67_v4 = vsel %vm66_vm0, %v2105_v1, 0.0  ;;  %v2119_v5 = vld [vmem:[%s3945_s1 + $0x8] sm:$0xff]  ;;  %v76_v6 = vsel %vm66_vm0, %v2110_v2, 0.0  ;;  %v2133_v9 = vld [vmem:[%s3945_s1 + $0x20] sm:$0xff]  ;;  %v2142_v12 = vld [vmem:[%s3945_s1 + $0x38] sm:$0xff] }
  0x11   :  { %74 = vadd.xlane.f32.xlu1 %v73_v3  ;;  %68 = vadd.xlane.f32.xlu0 %v67_v4  ;;  %v70_v7 = vsel %vm66_vm0, %v2119_v5, 0.0  ;;  %v2128_v8 = vld [vmem:[%s3945_s1 + $0x28] sm:$0xff]  ;;  %v79_v11 = vsel %vm66_vm0, %v2133_v9, 0.0  ;;  %v2147_v13 = vld [vmem:[%s3945_s1 + $0x30] sm:$0xff]  ;;  %v88_v14 = vsel %vm66_vm0, %v2142_v12, 0.0  ;;  %v2161_v17 = vld [vmem:[%s3945_s1 + $0x40] sm:$0xff] }
  0x12   :  { %v82_v10 = vsel %vm66_vm0, %v2128_v8, 0.0  ;;  %v85_v15 = vsel %vm66_vm0, %v2147_v13, 0.0  ;;  %v2156_v16 = vld [vmem:[%s3945_s1 + $0x48] sm:$0xff]  ;;  %v91_v19 = vsel %vm66_vm0, %v2161_v17, 0.0  ;;  %v2170_v20 = vld [vmem:[%s3945_s1 + $0x58] sm:$0xff]  ;;  %v2175_v21 = vld [vmem:[%s3945_s1 + $0x50] sm:$0xff] }
  0x13   :  { %v94_v18 = vsel %vm66_vm0, %v2156_v16, 0.0  ;;  %v100_v22 = vsel %vm66_vm0, %v2170_v20, 0.0  ;;  %v97_v23 = vsel %vm66_vm0, %v2175_v21, 0.0  ;;  %v2184_v24 = vld [vmem:[%s3945_s1 + $0x68] sm:$0xff]  ;;  %v2189_v25 = vld [vmem:[%s3945_s1 + $0x60] sm:$0xff]  ;;  %v2198_v28 = vld [vmem:[%s3945_s1 + $0x78] sm:$0xff] }
  0x14   :  { %v106_v26 = vsel %vm66_vm0, %v2184_v24, 0.0  ;;  %v103_v27 = vsel %vm66_vm0, %v2189_v25, 0.0  ;;  %v2203_v29 = vld [vmem:[%s3945_s1 + $0x70] sm:$0xff]  ;;  %v112_v30 = vsel %vm66_vm0, %v2198_v28, 0.0  ;;  %v2212_v32 = vld [vmem:[%s3945_s1 + $0x88] sm:$0xff]  ;;  %v2217_v33 = vld [vmem:[%s3945_s1 + $0x80] sm:$0xff] }
  0x15   :  { %77 = vadd.xlane.f32.xlu1 %v76_v6  ;;  %71 = vadd.xlane.f32.xlu0 %v70_v7  ;;  %v109_v31 = vsel %vm66_vm0, %v2203_v29, 0.0  ;;  %v540_v34 = vsel %vm66_vm0, %v2212_v32, 0.0  ;;  %v537_v35 = vsel %vm66_vm0, %v2217_v33, 0.0  ;;  %v2226_v36 = vld [vmem:[%s3945_s1 + $0x98] sm:$0xff]  ;;  %v2231_v37 = vld [vmem:[%s3945_s1 + $0x90] sm:$0xff]  ;;  %v2240_v40 = vld [vmem:[%s3945_s1 + $0xa8] sm:$0xff] }
  0x16   :  { %v546_v38 = vsel %vm66_vm0, %v2226_v36, 0.0  ;;  %v543_v39 = vsel %vm66_vm0, %v2231_v37, 0.0  ;;  %v2245_v41 = vld [vmem:[%s3945_s1 + $0xa0] sm:$0xff]  ;;  %v552_v42 = vsel %vm66_vm0, %v2240_v40, 0.0  ;;  %v2254_v44 = vld [vmem:[%s3945_s1 + $0xb8] sm:$0xff]  ;;  %v2259_v45 = vld [vmem:[%s3945_s1 + $0xb0] sm:$0xff] }
  0x17   :  { %v549_v43 = vsel %vm66_vm0, %v2245_v41, 0.0  ;;  %v558_v46 = vsel %vm66_vm0, %v2254_v44, 0.0  ;;  %v555_v47 = vsel %vm66_vm0, %v2259_v45, 0.0  ;;  %v2268_v48 = vld [vmem:[%s3945_s1 + $0xc8] sm:$0xff]  ;;  %v2273_v49 = vld [vmem:[%s3945_s1 + $0xc0] sm:$0xff]  ;;  %v2282_v52 = vld [vmem:[%s3945_s1 + $0xd8] sm:$0xff] }
  0x18   :  { %v564_v50 = vsel %vm66_vm0, %v2268_v48, 0.0  ;;  %v561_v51 = vsel %vm66_vm0, %v2273_v49, 0.0  ;;  %v2287_v53 = vld [vmem:[%s3945_s1 + $0xd0] sm:$0xff]  ;;  %v570_v54 = vsel %vm66_vm0, %v2282_v52, 0.0  ;;  %v2296_v56 = vld [vmem:[%s3945_s1 + $0xe8] sm:$0xff]  ;;  %v2301_v57 = vld [vmem:[%s3945_s1 + $0xe0] sm:$0xff] }
  0x19   :  { %83 = vadd.xlane.f32.xlu1 %v82_v10  ;;  %80 = vadd.xlane.f32.xlu0 %v79_v11  ;;  %v567_v55 = vsel %vm66_vm0, %v2287_v53, 0.0  ;;  %v576_v58 = vsel %vm66_vm0, %v2296_v56, 0.0  ;;  %v573_v59 = vsel %vm66_vm0, %v2301_v57, 0.0  ;;  %v2310_v60 = vld [vmem:[%s3945_s1 + $0xf8] sm:$0xff]  ;;  %v2315_v61 = vld [vmem:[%s3945_s1 + $0xf0] sm:$0xff]  ;;  %s1792_s5 = sld [smem:[#allocation2 + $0x2]] }
  0x1a   :  { %v582_v62 = vsel %vm66_vm0, %v2310_v60, 0.0  ;;  %v579_v63 = vsel %vm66_vm0, %v2315_v61, 0.0 }
  0x1d   :  { %89 = vadd.xlane.f32.xlu1 %v88_v14  ;;  %86 = vadd.xlane.f32.xlu0 %v85_v15 }
  0x21   :  { %95 = vadd.xlane.f32.xlu1 %v94_v18  ;;  %92 = vadd.xlane.f32.xlu0 %v91_v19 }
  0x25   :  { %101 = vadd.xlane.f32.xlu1 %v100_v22  ;;  %98 = vadd.xlane.f32.xlu0 %v97_v23 }
  0x29   :  { %107 = vadd.xlane.f32.xlu1 %v106_v26  ;;  %104 = vadd.xlane.f32.xlu0 %v103_v27 }
  0x2d   :  { %113 = vadd.xlane.f32.xlu1 %v112_v30  ;;  %110 = vadd.xlane.f32.xlu0 %v109_v31 }
  0x31   :  { %541 = vadd.xlane.f32.xlu1 %v540_v34  ;;  %538 = vadd.xlane.f32.xlu0 %v537_v35 }
  0x35   :  { %547 = vadd.xlane.f32.xlu1 %v546_v38  ;;  %544 = vadd.xlane.f32.xlu0 %v543_v39 }
  0x39   :  { %553 = vadd.xlane.f32.xlu1 %v552_v42  ;;  %550 = vadd.xlane.f32.xlu0 %v549_v43 }
  0x3d   :  { %559 = vadd.xlane.f32.xlu1 %v558_v46  ;;  %556 = vadd.xlane.f32.xlu0 %v555_v47 }
  0x41   :  { %565 = vadd.xlane.f32.xlu1 %v564_v50  ;;  %562 = vadd.xlane.f32.xlu0 %v561_v51 }
  0x45   :  { %571 = vadd.xlane.f32.xlu1 %v570_v54  ;;  %568 = vadd.xlane.f32.xlu0 %v567_v55 }
  0x49   :  { %577 = vadd.xlane.f32.xlu1 %v576_v58  ;;  %574 = vadd.xlane.f32.xlu0 %v573_v59 }
  0x4d   :  { %583 = vadd.xlane.f32.xlu1 %v582_v62  ;;  %580 = vadd.xlane.f32.xlu0 %v579_v63 }
  0x9e   :  { %v75_v3 = vpop.xlane.xlu1 %74  ;;  %v69_v4 = vpop.xlane.xlu0 %68 }
  0x9f   :  { %v2321_v6 = vmul.f32 0.015625, %v75_v3  ;;  %v2323_v7 = vmul.f32 0.015625, %v69_v4 }
  0xa1   :  { %4030 = vst [vmem:[#allocation5_spill] sm:$0xff] %v2321_v6  ;;  %4031 = vst [vmem:[#allocation6_spill] sm:$0xff] %v2323_v7  ;;  %v131_v10 = vsub.f32 %v2105_v1, %v2323_v7  ;;  %v133_v11 = vsub.f32 %v2100_v0, %v2321_v6 }
  0xa2   :  { %v72_v18 = vpop.xlane.xlu0 %71  ;;  %v78_v27 = vpop.xlane.xlu1 %77 }
  0xa3   :  { %v147_v14 = vmul.f32 %v131_v10, %v131_v10  ;;  %v149_v15 = vmul.f32 %v133_v11, %v133_v11  ;;  %v2331_v23 = vmul.f32 0.015625, %v72_v18  ;;  %v2338_v34 = vmul.f32 0.015625, %v78_v27 }
  0xa5   :  { %v163_v19 = vsel %vm66_vm0, %v147_v14, 0.0  ;;  %v169_v22 = vsel %vm66_vm0, %v149_v15, 0.0  ;;  %v132_v26 = vsub.f32 %v2119_v5, %v2331_v23  ;;  %v134_v39 = vsub.f32 %v2110_v2, %v2338_v34 }
  0xa6   :  { %164 = vadd.xlane.f32.xlu0 %v163_v19  ;;  %v81_v30 = vpop.xlane.xlu0 %80  ;;  %v84_v35 = vpop.xlane.xlu1 %83 }
  0xa7   :  { %v148_v1 = vmul.f32 %v132_v26, %v132_v26  ;;  %v2336_v0 = vmul.f32 0.015625, %v81_v30  ;;  %v2344_v43 = vmul.f32 0.015625, %v84_v35  ;;  %v150_v46 = vmul.f32 %v134_v39, %v134_v39 }
  0xa9   :  { %v166_v31 = vsel %vm66_vm0, %v148_v1, 0.0  ;;  %4032 = vst [vmem:[#allocation7_spill] sm:$0xff] %v2336_v0  ;;  %v135_v42 = vsub.f32 %v2133_v9, %v2336_v0  ;;  %4033 = vst [vmem:[#allocation8_spill] sm:$0xff] %v2344_v43  ;;  %v172_v50 = vsel %vm66_vm0, %v150_v46, 0.0  ;;  %v136_v51 = vsub.f32 %v2128_v8, %v2344_v43 }
  0xaa   :  { %170 = vadd.xlane.f32.xlu0 %v169_v22  ;;  %167 = vadd.xlane.f32.xlu1 %v166_v31  ;;  %v87_v38 = vpop.xlane.xlu0 %86  ;;  %v90_v62 = vpop.xlane.xlu1 %89 }
  0xab   :  { %v2346_v5 = vmul.f32 0.015625, %v87_v38  ;;  %v151_v47 = vmul.f32 %v135_v42, %v135_v42  ;;  %v152_v55 = vmul.f32 %v136_v51, %v136_v51  ;;  %v2358_v8 = vmul.f32 0.015625, %v90_v62 }
  0xac   :  { %v228_v62 = vrot.slane %v2331_v23, 7 }
  0xad   :  { %4034 = vst [vmem:[#allocation9_spill] sm:$0xff] %v2346_v5  ;;  %v175_v54 = vsel %vm66_vm0, %v151_v47, 0.0  ;;  %v137_v2 = vsub.f32 %v2147_v13, %v2346_v5  ;;  %v178_v9 = vsel %vm66_vm0, %v152_v55, 0.0  ;;  %4036 = vst [vmem:[#allocation11_spill] sm:$0xff] %v2358_v8  ;;  %v138_v10 = vsub.f32 %v2142_v12, %v2358_v8 }
  0xae   :  { %173 = vadd.xlane.f32.xlu1 %v172_v50  ;;  %176 = vadd.xlane.f32.xlu0 %v175_v54  ;;  %v93_v59 = vpop.xlane.xlu0 %92  ;;  %v96_v11 = vpop.xlane.xlu1 %95 }
  0xaf   :  { %v153_v58 = vmul.f32 %v137_v2, %v137_v2  ;;  %v2356_v3 = vmul.f32 0.015625, %v93_v59  ;;  %v154_v14 = vmul.f32 %v138_v10, %v138_v10  ;;  %v2366_v19 = vmul.f32 0.015625, %v96_v11 }
  0xb1   :  { %v181_v63 = vsel %vm66_vm0, %v153_v58, 0.0  ;;  %4035 = vst [vmem:[#allocation10_spill] sm:$0xff] %v2356_v3  ;;  %v139_v13 = vsub.f32 %v2161_v17, %v2356_v3  ;;  %4038 = vst [vmem:[#allocation13_spill] sm:$0xff] %v2366_v19  ;;  %v184_v22 = vsel %vm66_vm0, %v154_v14, 0.0  ;;  %v140_v27 = vsub.f32 %v2156_v16, %v2366_v19 }
  0xb2   :  { %179 = vadd.xlane.f32.xlu1 %v178_v9  ;;  %182 = vadd.xlane.f32.xlu0 %v181_v63  ;;  %v99_v4 = vpop.xlane.xlu0 %98  ;;  %v102_v30 = vpop.xlane.xlu1 %101  ;;  %v33_v16 = vlaneseq  ;;  %v230_v14 = vrot.slane %v2338_v34, 7 }
  0xb3   :  { %v2364_v15 = vmul.f32 0.015625, %v99_v4  ;;  %v155_v18 = vmul.f32 %v139_v13, %v139_v13  ;;  %v156_v17 = vmul.f32 %v140_v27, %v140_v27  ;;  %v2374_v31 = vmul.f32 0.015625, %v102_v30 }
  0xb4   :  { %v2386_v2 = vshrl.u32 %v33_v16, 7  ;;  %v3951_v30 = vrot.slane %v2321_v6, 1  ;;  %v2422_v16 = vstv %s1792_s5 }
  0xb5   :  { %4037 = vst [vmem:[#allocation12_spill] sm:$0xff] %v2364_v15  ;;  %v187_v26 = vsel %vm66_vm0, %v155_v18, 0.0  ;;  %v141_v12 = vsub.f32 %v2175_v21, %v2364_v15  ;;  %4039 = vst [vmem:[#allocation14_spill] sm:$0xff] %v2374_v31  ;;  %v190_v38 = vsel %vm66_vm0, %v156_v17, 0.0  ;;  %v142_v42 = vsub.f32 %v2170_v20, %v2374_v31 }
  0xb6   :  { %185 = vadd.xlane.f32.xlu1 %v184_v22  ;;  %188 = vadd.xlane.f32.xlu0 %v187_v26  ;;  %v105_v35 = vpop.xlane.xlu0 %104  ;;  %v108_v47 = vpop.xlane.xlu1 %107  ;;  %vm243_vm1 = vcmp.lt.s32.totalorder %v2386_v2, 1  ;;  %v2403_v18 = vstv %s30_s29  ;;  %vm308_vm2 = vcmp.lt.s32.totalorder %v2386_v2, 7  ;;  %vm211_vm4 = vcmp.eq.s32.totalorder %v2386_v2, 0 }
  0xb7   :  { %v157_v1 = vmul.f32 %v141_v12, %v141_v12  ;;  %v2380_v46 = vmul.f32 0.015625, %v105_v35  ;;  %v158_v50 = vmul.f32 %v142_v42, %v142_v42  ;;  %v2382_v51 = vmul.f32 0.015625, %v108_v47 }
  0xb8   :  { %v3952_v42 = vrot.slane %v2338_v34, 1 }
  0xb9   :  { %v193_v39 = vsel %vm66_vm0, %v157_v1, 0.0  ;;  %4040 = vst [vmem:[#allocation15_spill] sm:$0xff] %v2380_v46  ;;  %4041 = vst [vmem:[#allocation16_spill] sm:$0xff] %v2382_v51  ;;  %v143_v54 = vsub.f32 %v2189_v25, %v2380_v46  ;;  %v196_v55 = vsel %vm66_vm0, %v158_v50, 0.0  ;;  %v144_v58 = vsub.f32 %v2184_v24, %v2382_v51 }
  0xba   :  { %191 = vadd.xlane.f32.xlu1 %v190_v38  ;;  %194 = vadd.xlane.f32.xlu0 %v193_v39  ;;  %v111_v21 = vpop.xlane.xlu0 %110  ;;  %v114_v59 = vpop.xlane.xlu1 %113  ;;  %v3949_v25 = vrot.slane %v2323_v7, 7  ;;  %v229_v24 = vrot.slane %v2321_v6, 7  ;;  %v231_v1 = vrot.slane %v2336_v0, 7  ;;  %v2419_v39 = vstv %s1791_s30 }
  0xbb   :  { %v2389_v9 = vmul.f32 0.015625, %v111_v21  ;;  %v159_v20 = vmul.f32 %v143_v54, %v143_v54  ;;  %v2397_v4 = vmul.f32 0.015625, %v114_v59  ;;  %v160_v11 = vmul.f32 %v144_v58, %v144_v58 }
  0xbc   :  { %v258_v22 = vsel %vm243_vm1, %v3949_v25, %v228_v62  ;;  %v256_v47 = vsel %vm243_vm1, %v229_v24, %v230_v14  ;;  %v362_v21 = vmul.f32 %v2419_v39, %v2338_v34  ;;  %v296_v50 = vrot.slane %v2336_v0, 1 }
  0xbd   :  { %4042 = vst [vmem:[#allocation17_spill] sm:$0xff] %v2389_v9  ;;  %v199_v63 = vsel %vm66_vm0, %v159_v20, 0.0  ;;  %4043 = vst [vmem:[#allocation18_spill] sm:$0xff] %v2397_v4  ;;  %v145_v13 = vsub.f32 %v2203_v29, %v2389_v9  ;;  %v202_v26 = vsel %vm66_vm0, %v160_v11, 0.0  ;;  %v146_v12 = vsub.f32 %v2198_v28, %v2397_v4 }
  0xbe   :  { %197 = vadd.xlane.f32.xlu1 %v196_v55  ;;  %200 = vadd.xlane.f32.xlu0 %v199_v63  ;;  %v539_v10 = vpop.xlane.xlu0 %538  ;;  %v3950_v29 = vrot.slane %v2331_v23, 1  ;;  %v542_v35 = vpop.xlane.xlu1 %541  ;;  %v343_v28 = vmul.f32 %v2403_v18, %v258_v22  ;;  %v360_v58 = vmul.f32 %v2419_v39, %v2331_v23  ;;  %v232_v59 = vrot.slane %v2344_v43, 7 }
  0xbf   :  { %v161_v27 = vmul.f32 %v145_v13, %v145_v13  ;;  %v2414_v17 = vmul.f32 0.015625, %v539_v10  ;;  %v162_v55 = vmul.f32 %v146_v12, %v146_v12  ;;  %v257_v10 = vsel %vm243_vm1, %v228_v62, %v229_v24 }
  0xc0   :  { %v322_v20 = vsel %vm308_vm2, %v3950_v29, %v3951_v30  ;;  %v297_v11 = vrot.slane %v2344_v43, 1  ;;  %v255_v13 = vsel %vm243_vm1, %v230_v14, %v231_v1  ;;  %v3954_v12 = vrot.slane %v2346_v5, 7 }
  0xc1   :  { %4044 = vst [vmem:[#allocation19_spill] sm:$0xff] %v2414_v17  ;;  %v205_v38 = vsel %vm66_vm0, %v161_v27, 0.0  ;;  %v601_v63 = vsub.f32 %v2217_v33, %v2414_v17  ;;  %v208_v22 = vsel %vm66_vm0, %v162_v55, 0.0  ;;  %v376_v27 = vadd.f32 %v360_v58, %v343_v28 }
  0xc2   :  { %203 = vadd.xlane.f32.xlu1 %v202_v26  ;;  %206 = vadd.xlane.f32.xlu0 %v205_v38  ;;  %v545_v54 = vpop.xlane.xlu0 %544  ;;  %v345_v26 = vmul.f32 %v2403_v18, %v256_v47  ;;  %v393_v25 = vmul.f32 %v2422_v16, %v322_v20  ;;  %v320_v33 = vsel %vm308_vm2, %v3952_v42, %v296_v50  ;;  %v2456_v24 = vmul.f32 0.015625, %v542_v35  ;;  %v548_v14 = vpop.xlane.xlu1 %547 }
  0xc3   :  { %v617_v38 = vmul.f32 %v601_v63, %v601_v63  ;;  %v363_v62 = vmul.f32 %v2419_v39, %v2336_v0  ;;  %v254_v28 = vsel %vm243_vm1, %v231_v1, %v232_v59  ;;  %v346_v47 = vmul.f32 %v2403_v18, %v255_v13 }
  0xc4   :  { %v298_v55 = vrot.slane %v2346_v5, 1  ;;  %v361_v58 = vmul.f32 %v2419_v39, %v2321_v6  ;;  %v319_v63 = vsel %vm308_vm2, %v296_v50, %v297_v11  ;;  %v602_v29 = vsub.f32 %v2212_v32, %v2456_v24 }
  0xc5   :  { %v633_v20 = vsel %vm66_vm0, %v617_v38, 0.0  ;;  %v409_v1 = vadd.f32 %v393_v25, %v376_v27  ;;  %v395_v13 = vmul.f32 %v2422_v16, %v320_v33  ;;  %v299_v30 = vrot.slane %v2358_v8, 1 }
  0xc6   :  { %209 = vadd.xlane.f32.xlu1 %v208_v22  ;;  %v2467_v22 = vmul.f32 0.015625, %v545_v54  ;;  %634 = vadd.xlane.f32.xlu0 %v633_v20  ;;  %v551_v35 = vpop.xlane.xlu0 %550  ;;  %v253_v38 = vsel %vm243_vm1, %v232_v59, %v3954_v12  ;;  %v378_v42 = vadd.f32 %v362_v21, %v345_v26  ;;  %v344_v50 = vmul.f32 %v2403_v18, %v257_v10  ;;  %v554_v59 = vpop.xlane.xlu1 %553 }
  0xc7   :  { %v364_v54 = vmul.f32 %v2419_v39, %v2344_v43  ;;  %v347_v20 = vmul.f32 %v2403_v18, %v254_v28  ;;  %v379_v0 = vadd.f32 %v363_v62, %v346_v47  ;;  %v396_v32 = vmul.f32 %v2422_v16, %v319_v63 }
  0xc8   :  { %4045 = vst [vmem:[#allocation20_spill] sm:$0xff] %v2467_v22  ;;  %v318_v25 = vsel %vm308_vm2, %v297_v11, %v298_v55  ;;  %v2484_v27 = vmul.f32 0.015625, %v551_v35  ;;  %v348_v33 = vmul.f32 %v2403_v18, %v253_v38  ;;  %v365_v21 = vmul.f32 %v2419_v39, %v2346_v5 }
  0xc9   :  { %v618_v10 = vmul.f32 %v602_v29, %v602_v29  ;;  %v603_v26 = vsub.f32 %v2231_v37, %v2467_v22  ;;  %v1794_v12 = vmul.f32 -1.442695, %v409_v1  ;;  %v411_v28 = vadd.f32 %v395_v13, %v378_v42 }
  0xca   :  { %4046 = vst [vmem:[#allocation21_spill] sm:$0xff] %v2484_v27  ;;  %v317_v62 = vsel %vm308_vm2, %v298_v55, %v299_v30  ;;  %v2495_v11 = vmul.f32 0.015625, %v548_v14  ;;  %v380_v47 = vadd.f32 %v364_v54, %v347_v20  ;;  %v397_v63 = vmul.f32 %v2422_v16, %v318_v25 }
  0xcb   :  { %v636_v35 = vsel %vm66_vm0, %v618_v10, 0.0  ;;  %v619_v38 = vmul.f32 %v603_v26, %v603_v26  ;;  %v4047_v29 = vrot.slane %v2338_v34, 1  ;;  %v4048_v43 = vrot.slane %v2321_v6, 1 }
  0xcc   :  { %v412_v42 = vadd.f32 %v396_v32, %v379_v0  ;;  %637 = vadd.xlane.f32.xlu1 %v636_v35  ;;  %v604_v55 = vsub.f32 %v2226_v36, %v2495_v11  ;;  %v605_v14 = vsub.f32 %v2245_v41, %v2484_v27  ;;  %v234_v1 = vrot.slane %v2358_v8, 7  ;;  %v560_v32 = vpop.xlane.xlu1 %559 }
  0xcd   :  { %v321_v37 = vsel %vm308_vm2, %v4048_v43, %v4047_v29  ;;  %v381_v13 = vadd.f32 %v365_v21, %v348_v33  ;;  %v398_v54 = vmul.f32 %v2422_v16, %v317_v62  ;;  %v639_v20 = vsel %vm66_vm0, %v619_v38, 0.0  ;;  %v557_v62 = vpop.xlane.xlu0 %556 }
  0xce   :  { %v377_v25 = vadd.f32 %v361_v58, %v344_v50  ;;  %v1796_v10 = vmul.f32 -1.442695, %v411_v28  ;;  %640 = vadd.xlane.f32.xlu0 %v639_v20  ;;  %v394_v43 = vmul.f32 %v2422_v16, %v321_v37  ;;  %1877 = vpow2.f32 %v1794_v12 }
  0xcf   :  { %v413_v0 = vadd.f32 %v397_v63, %v380_v47  ;;  %v1797_v26 = vmul.f32 -1.442695, %v412_v42  ;;  %v235_v36 = vrot.slane %v2356_v3, 7  ;;  %v620_v35 = vmul.f32 %v604_v55, %v604_v55 }
  0xd0   :  { %v621_v41 = vmul.f32 %v605_v14, %v605_v14  ;;  %v4049_v29 = vrot.slane %v2346_v5, 7  ;;  %v414_v21 = vadd.f32 %v398_v54, %v381_v13  ;;  %v410_v58 = vadd.f32 %v394_v43, %v377_v25  ;;  %v2530_v54 = vpop.xlane.xlu1 %565 }
  0xd1   :  { %1879 = vpow2.f32 %v1796_v10  ;;  %v642_v50 = vsel %vm66_vm0, %v620_v35, 0.0  ;;  %v366_v28 = vmul.f32 %v2419_v39, %v2358_v8  ;;  %v1798_v47 = vmul.f32 -1.442695, %v413_v0 }
  0xd2   :  { %v252_v33 = vsel %vm243_vm1, %v4049_v29, %v234_v1  ;;  %v645_v12 = vsel %vm66_vm0, %v621_v41, 0.0  ;;  %v300_v63 = vrot.slane %v2356_v3, 1  ;;  %643 = vadd.xlane.f32.xlu1 %v642_v50  ;;  %1881 = vpow2.f32 %v1797_v26  ;;  %v563_v41 = vpop.xlane.xlu0 %562 }
  0xd3   :  { %646 = vadd.xlane.f32.xlu0 %v645_v12  ;;  %v349_v38 = vmul.f32 %v2403_v18, %v252_v33  ;;  %v301_v37 = vrot.slane %v2366_v19, 1  ;;  %v251_v42 = vsel %vm243_vm1, %v234_v1, %v235_v36  ;;  %v1799_v55 = vmul.f32 -1.442695, %v414_v21 }
  0xd4   :  { %v236_v14 = vrot.slane %v2366_v19, 7  ;;  %v2528_v13 = vmul.f32 0.015625, %v557_v62  ;;  %v2533_v20 = vadd.s32 120, %v2386_v2  ;;  %v1795_v10 = vmul.f32 -1.442695, %v410_v58 }
  0xd5   :  { %v3957_v43 = vrot.slane %v2364_v15, 7  ;;  %v2537_v0 = vmul.f32 0.015625, %v554_v59  ;;  %1883 = vpow2.f32 %v1798_v47  ;;  %v316_v1 = vsel %vm308_vm2, %v299_v30, %v300_v63 }
  0xd6   :  { %4050 = vst [vmem:[#allocation22_spill] sm:$0xff] %v2528_v13  ;;  %v350_v26 = vmul.f32 %v2403_v18, %v251_v42  ;;  %v367_v35 = vmul.f32 %v2419_v39, %v2356_v3  ;;  %v382_v29 = vadd.f32 %v366_v28, %v349_v38  ;;  %v368_v33 = vmul.f32 %v2419_v39, %v2366_v19 }
  0xd7   :  { %4051 = vst [vmem:[#allocation23_spill] sm:$0xff] %v2537_v0  ;;  %v315_v59 = vsel %vm308_vm2, %v300_v63, %v301_v37  ;;  %v606_v21 = vsub.f32 %v2240_v40, %v2537_v0  ;;  %1885 = vpow2.f32 %v1799_v55  ;;  %v250_v30 = vsel %vm243_vm1, %v235_v36, %v236_v14  ;;  %v2566_v36 = vpop.xlane.xlu1 %571 }
  0xd8   :  { %v1878_v62 = vpop.eup %1877  ;;  %v302_v58 = vrot.slane %v2364_v15, 1  ;;  %v607_v50 = vsub.f32 %v2259_v45, %v2528_v13  ;;  %v399_v12 = vmul.f32 %v2422_v16, %v316_v1  ;;  %v249_v47 = vsel %vm243_vm1, %v236_v14, %v3957_v43 }
  0xd9   :  { %v622_v40 = vmul.f32 %v606_v21, %v606_v21  ;;  %v383_v63 = vadd.f32 %v367_v35, %v350_v26  ;;  %v400_v38 = vmul.f32 %v2422_v16, %v315_v59  ;;  %v2564_v42 = vmul.f32 0.015625, %v560_v32  ;;  %v2576_v35 = vpop.xlane.xlu0 %568 }
  0xda   :  { %v623_v55 = vmul.f32 %v607_v50, %v607_v50  ;;  %v473_v45 = vadd.f32 1.0, %v1878_v62  ;;  %v351_v1 = vmul.f32 %v2403_v18, %v250_v30  ;;  %v369_v28 = vmul.f32 %v2419_v39, %v2364_v15 }
  0xdb   :  { %4052 = vst [vmem:[#allocation24_spill] sm:$0xff] %v2564_v42  ;;  %v1880_v25 = vpop.eup %1879  ;;  %v648_v19 = vsel %vm66_vm0, %v622_v40, 0.0  ;;  %v314_v14 = vsel %vm308_vm2, %v301_v37, %v302_v58  ;;  %v352_v26 = vmul.f32 %v2403_v18, %v249_v47  ;;  %v608_v59 = vsub.f32 %v2254_v44, %v2564_v42 }
  0xdc   :  { %649 = vadd.xlane.f32.xlu1 %v648_v19  ;;  %v651_v32 = vsel %vm66_vm0, %v623_v55, 0.0  ;;  %v1882_v21 = vpop.eup %1881  ;;  %v2582_v62 = vmul.f32 %v2419_v39, %v2323_v7  ;;  %v415_v30 = vadd.f32 %v399_v12, %v382_v29  ;;  %v4053_v50 = vrot.slane %v2374_v31, 1 }
  0xdd   :  { %v2588_v47 = vmul.f32 0.015625, %v563_v41  ;;  %652 = vadd.xlane.f32.xlu0 %v651_v32  ;;  %1887 = vpow2.f32 %v1795_v10  ;;  %v475_v19 = vadd.f32 1.0, %v1880_v25  ;;  %v416_v40 = vadd.f32 %v400_v38, %v383_v63  ;;  %v578_v10 = vpop.xlane.xlu1 %577 }
  0xde   :  { %v313_v37 = vsel %vm308_vm2, %v302_v58, %v4053_v50  ;;  %v238_v55 = vrot.slane %v2374_v31, 7  ;;  %v4055_v44 = vrot.slane %v2331_v23, 1  ;;  %v4056_v43 = vrot.slane %v2323_v7, 1 }
  0xdf   :  { %4054 = vst [vmem:[#allocation25_spill] sm:$0xff] %v2588_v47  ;;  %1889 = vrcp.f32 %v473_v45  ;;  %v384_v12 = vadd.f32 %v368_v33, %v351_v1  ;;  %v401_v58 = vmul.f32 %v2422_v16, %v314_v14  ;;  %v1884_v41 = vpop.eup %1883  ;;  %v476_v50 = vadd.f32 1.0, %v1882_v21 }
  0xe0   :  { %v2597_v29 = vsel %vm308_vm2, %v4056_v43, %v4055_v44  ;;  %v385_v32 = vadd.f32 %v369_v28, %v352_v26  ;;  %v402_v25 = vmul.f32 %v2422_v16, %v313_v37  ;;  %v624_v63 = vmul.f32 %v608_v59, %v608_v59  ;;  %v575_v26 = vpop.xlane.xlu0 %574 }
  0xe1   :  { %v1800_v38 = vmul.f32 -1.442695, %v415_v30  ;;  %v370_v3 = vmul.f32 %v2419_v39, %v2374_v31  ;;  %v239_v8 = vrot.slane %v2380_v46, 7  ;;  %v609_v43 = vsub.f32 %v2273_v49, %v2588_v47  ;;  %v1886_v45 = vpop.eup %1885 }
  0xe2   :  { %1891 = vrcp.f32 %v475_v19  ;;  %v1801_v33 = vmul.f32 -1.442695, %v416_v40  ;;  %v4057_v1 = vrot.slane %v2364_v15, 7  ;;  %v654_v14 = vsel %vm66_vm0, %v624_v63, 0.0 }
  0xe3   :  { %v477_v59 = vadd.f32 1.0, %v1884_v41  ;;  %v417_v21 = vadd.f32 %v401_v58, %v384_v12  ;;  %v2611_v30 = vmul.f32 0.015625, %v578_v10  ;;  %655 = vadd.xlane.f32.xlu1 %v654_v14  ;;  %v625_v37 = vmul.f32 %v609_v43, %v609_v43 }
  0xe4   :  { %v248_v28 = vsel %vm243_vm1, %v4057_v1, %v238_v55  ;;  %1893 = vrcp.f32 %v476_v50  ;;  %v418_v44 = vadd.f32 %v402_v25, %v385_v32  ;;  %v3961_v49 = vrot.slane %v2382_v51, 1  ;;  %v584_v50 = vpop.xlane.xlu1 %583 }
  0xe5   :  { %4058 = vst [vmem:[#allocation26_spill] sm:$0xff] %v2611_v30  ;;  %v304_v19 = vrot.slane %v2380_v46, 1  ;;  %1895 = vpow2.f32 %v1800_v38  ;;  %v247_v40 = vsel %vm243_vm1, %v238_v55, %v239_v8  ;;  %v657_v1 = vsel %vm66_vm0, %v625_v37, 0.0 }
  0xe6   :  { %v2618_v63 = vmul.f32 0.015625, %v575_v26  ;;  %v478_v41 = vadd.f32 1.0, %v1886_v45  ;;  %1897 = vpow2.f32 %v1801_v33  ;;  %v353_v12 = vmul.f32 %v2403_v18, %v248_v28  ;;  %658 = vadd.xlane.f32.xlu0 %v657_v1 }
  0xe7   :  { %v3962_v58 = vrot.slane %v2382_v51, 7  ;;  %1899 = vrcp.f32 %v477_v59  ;;  %v1802_v32 = vmul.f32 -1.442695, %v417_v21  ;;  %v2624_v25 = vmul.f32 %v2419_v39, %v2382_v51  ;;  %v2627_v10 = vpop.eup %1887 }
  0xe8   :  { %4059 = vst [vmem:[#allocation27_spill] sm:$0xff] %v2618_v63  ;;  %v3963_v55 = vrot.slane %v2611_v30, 7  ;;  %v1803_v38 = vmul.f32 -1.442695, %v418_v44  ;;  %v4060_v43 = vrot.slane %v2374_v31, 1  ;;  %v354_v33 = vmul.f32 %v2403_v18, %v247_v40 }
  0xe9   :  { %v371_v28 = vmul.f32 %v2419_v39, %v2380_v46  ;;  %v2636_v14 = vpop.eup %1889  ;;  %v311_v26 = vsel %vm308_vm2, %v304_v19, %v3961_v49  ;;  %v2643_v59 = vmul.f32 0.015625, %v2576_v35  ;;  %v3960_v21 = vrot.slane %v2618_v63, 7 }
  0xea   :  { %v312_v45 = vsel %vm308_vm2, %v4060_v43, %v304_v19  ;;  %4061 = vst [vmem:[#allocation28_spill] sm:$0xff] %v2636_v14  ;;  %vm291_vm3 = vcmp.eq.s32.totalorder %v2533_v20, 127  ;;  %v2647_v37 = vmul.f32 0.015625, %v584_v50  ;;  %1901 = vrcp.f32 %v478_v41 }
  0xeb   :  { %4062 = vst [vmem:[#allocation29_spill] sm:$0xff] %v2643_v59  ;;  %v386_v44 = vadd.f32 %v370_v3, %v353_v12  ;;  %v246_v40 = vsel %vm243_vm1, %v239_v8, %v3962_v58  ;;  %v2654_v1 = vmul.f32 0.015625, %v2530_v54  ;;  %1903 = vpow2.f32 %v1802_v32 }
  0xec   :  { %4063 = vst [vmem:[#allocation30_spill] sm:$0xff] %v2647_v37  ;;  %v403_v35 = vmul.f32 %v2422_v16, %v312_v45  ;;  %v699_v19 = vsel %vm243_vm1, %v3960_v21, %v3963_v55  ;;  %v744_v3 = vrot.slane %v2647_v37, 1  ;;  %v2664_v41 = vpop.eup %1891  ;;  %v387_v12 = vadd.f32 %v371_v28, %v354_v33  ;;  %v581_v21 = vpop.xlane.xlu0 %580 }
  0xed   :  { %4064 = vst [vmem:[#allocation31_spill] sm:$0xff] %v2654_v1  ;;  %4065 = vst [vmem:[#allocation32_spill] sm:$0xff] %v2664_v41  ;;  %v404_v8 = vmul.f32 %v2422_v16, %v311_v26  ;;  %v610_v50 = vsub.f32 %v2268_v48, %v2654_v1  ;;  %1905 = vpow2.f32 %v1803_v38  ;;  %v2671_v32 = vmul.f32 %v2403_v18, %v246_v40 }
  0xee   :  { %v3966_v43 = vrot.slane %v2414_v17, 1  ;;  %v611_v45 = vsub.f32 %v2287_v53, %v2643_v59  ;;  %v2676_v49 = vpop.eup %1893  ;;  %v806_v28 = vmul.f32 %v2611_v30, %v2419_v39  ;;  %v790_v26 = vmul.f32 %v699_v19, %v2403_v18 }
  0xef   :  { %4066 = vst [vmem:[#allocation33_spill] sm:$0xff] %v2676_v49  ;;  %v626_v48 = vmul.f32 %v610_v50, %v610_v50  ;;  %v2682_v38 = vpop.eup %1895  ;;  %v419_v40 = vadd.f32 %v403_v35, %v386_v44  ;;  %v2685_v54 = vmul.f32 0.015625, %v2566_v36  ;;  %v420_v33 = vadd.f32 %v404_v8, %v387_v12 }
  0xf0   :  { %v760_v53 = vsel %vm308_vm2, %v744_v3, %v3966_v43  ;;  %v627_v58 = vmul.f32 %v611_v45, %v611_v45  ;;  %v2691_v55 = vpop.eup %1897  ;;  %v3969_v46 = vrot.slane %v2647_v37, 7  ;;  %v2695_v50 = vmul.f32 0.015625, %v581_v21 }
  0xf1   :  { %v660_v19 = vsel %vm66_vm0, %v626_v48, 0.0  ;;  %v2697_v31 = vpop.eup %1899  ;;  %v3973_v44 = vrot.slane %v2611_v30, 1  ;;  %v612_v45 = vsub.f32 %v2282_v52, %v2685_v54  ;;  %v822_v43 = vadd.f32 %v806_v28, %v790_v26 }
  0xf2   :  { %4067 = vst [vmem:[#allocation34_spill] sm:$0xff] %v2697_v31  ;;  %661 = vadd.xlane.f32.xlu1 %v660_v19  ;;  %v663_v35 = vsel %vm66_vm0, %v627_v58, 0.0  ;;  %v776_v12 = vsel %vm291_vm3, 0.0, %v760_v53  ;;  %v695_v21 = vrot.slane %v2695_v50, 7  ;;  %v743_v8 = vrot.slane %v2695_v50, 1 }
  0xf3   :  { %664 = vadd.xlane.f32.xlu0 %v663_v35  ;;  %v808_v48 = vmul.f32 %v2647_v37, %v2419_v39  ;;  %v807_v19 = vmul.f32 %v2695_v50, %v2419_v39  ;;  %v628_v36 = vmul.f32 %v612_v45, %v612_v45  ;;  %v613_v58 = vsub.f32 %v2301_v57, %v2618_v63 }
  0xf4   :  { %v2714_v52 = vpop.eup %1901  ;;  %v697_v28 = vsel %vm243_vm1, %v695_v21, %v3969_v46  ;;  %v4069_v26 = vrot.slane %v2611_v30, 7  ;;  %v745_v35 = vsel %vm308_vm2, %v743_v8, %v744_v3  ;;  %v746_v57 = vsel %vm308_vm2, %v3973_v44, %v743_v8 }
  0xf5   :  { %4068 = vst [vmem:[#allocation35_spill] sm:$0xff] %v2714_v52  ;;  %v2730_v45 = vpop.eup %1903  ;;  %v840_v15 = vmul.f32 %v776_v12, %v2422_v16  ;;  %v792_v46 = vmul.f32 %v697_v28, %v2403_v18  ;;  %v838_v6 = vmul.f32 %v746_v57, %v2422_v16  ;;  %v629_v3 = vmul.f32 %v613_v58, %v613_v58 }
  0xf6   :  { %v698_v53 = vsel %vm243_vm1, %v4069_v26, %v695_v21  ;;  %v839_v21 = vmul.f32 %v745_v35, %v2422_v16  ;;  %v666_v26 = vsel %vm66_vm0, %v628_v36, 0.0  ;;  %v614_v52 = vsub.f32 %v2296_v56, %v2611_v30 }
  0xf7   :  { %v791_v5 = vmul.f32 %v698_v53, %v2403_v18  ;;  %v2740_v31 = vpop.eup %1905  ;;  %v1804_v8 = vmul.f32 -1.442695, %v419_v40  ;;  %v824_v49 = vadd.f32 %v808_v48, %v792_v46  ;;  %v2742_v12 = vadd.f32 %v838_v6, %v822_v43  ;;  %667 = vadd.xlane.f32.xlu1 %v666_v26 }
  0xf8   :  { %v306_v28 = vrot.slane %v2389_v9, 1  ;;  %v669_v53 = vsel %vm66_vm0, %v629_v3, 0.0  ;;  %v630_v57 = vmul.f32 %v614_v52, %v614_v52  ;;  %v615_v36 = vsub.f32 %v2315_v61, %v2695_v50 }
  0xf9   :  { %v823_v44 = vadd.f32 %v807_v19, %v791_v5  ;;  %v4070_v58 = vrot.slane %v2389_v9, 7  ;;  %v4071_v56 = vrot.slane %v2382_v51, 7  ;;  %v682_v5 = vrot.slane %v2456_v24, 7  ;;  %670 = vadd.xlane.f32.xlu0 %v669_v53 }
  0xfa   :  { %v2755_v46 = vadd.f32 %v840_v15, %v824_v49  ;;  %v3975_v43 = vrot.slane %v2414_v17, 7  ;;  %v672_v48 = vsel %vm66_vm0, %v630_v57, 0.0  ;;  %v631_v19 = vmul.f32 %v615_v36, %v615_v36 }
  0xfb   :  { %v245_v40 = vsel %vm243_vm1, %v4071_v56, %v4070_v58  ;;  %v855_v6 = vadd.f32 %v839_v21, %v823_v44  ;;  %v616_v61 = vsub.f32 %v2310_v60, %v2647_v37  ;;  %1907 = vpow2.f32 %v1804_v8  ;;  %673 = vadd.xlane.f32.xlu1 %v672_v48 }
  0xfc   :  { %v1805_v52 = vmul.f32 -1.442695, %v420_v33  ;;  %v373_v35 = vmul.f32 %v2419_v39, %v2389_v9  ;;  %v683_v26 = vrot.slane %v2467_v22, 7  ;;  %v4072_v15 = vrot.slane %v2382_v51, 1 }
  0xfd   :  { %v356_v44 = vmul.f32 %v2403_v18, %v245_v40  ;;  %v675_v21 = vsel %vm66_vm0, %v631_v19, 0.0  ;;  %v632_v3 = vmul.f32 %v616_v61, %v616_v61  ;;  %v479_v60 = vadd.f32 1.0, %v2682_v38 }
  0xfe   :  { %v310_v49 = vsel %vm308_vm2, %v4072_v15, %v306_v28  ;;  %v388_v33 = vadd.f32 %v2624_v25, %v2671_v32  ;;  %v4073_v8 = vrot.slane %v2397_v4, 1  ;;  %v3976_v57 = vrot.slane %v2456_v24, 1  ;;  %676 = vadd.xlane.f32.xlu0 %v675_v21 }
  0xff   :  { %v711_v36 = vsel %vm243_vm1, %v3975_v43, %v682_v5  ;;  %v684_v58 = vrot.slane %v2495_v11, 7  ;;  %v731_v38 = vrot.slane %v2467_v22, 1  ;;  %v678_v56 = vsel %vm66_vm0, %v632_v3, 0.0 }
 0x100   :  { %v309_v53 = vsel %vm308_vm2, %v306_v28, %v4073_v8  ;;  %1909 = vpow2.f32 %v1805_v52  ;;  %v405_v25 = vmul.f32 %v2422_v16, %v310_v49  ;;  %v732_v32 = vrot.slane %v2495_v11, 1  ;;  %679 = vadd.xlane.f32.xlu1 %v678_v56 }
 0x101   :  { %v710_v28 = vsel %vm243_vm1, %v682_v5, %v683_v26  ;;  %v480_v40 = vadd.f32 1.0, %v2691_v55  ;;  %v4074_v48 = vrot.slane %v2323_v7, 7  ;;  %v4075_v19 = vrot.slane %v2397_v4, 7 }
 0x102   :  { %v389_v15 = vadd.f32 %v373_v35, %v356_v44  ;;  %v406_v52 = vmul.f32 %v2422_v16, %v309_v53  ;;  %v2801_v49 = vmul.f32 %v2419_v39, %v2397_v4  ;;  %v794_v5 = vmul.f32 %v2456_v24, %v2419_v39 }
 0x103   :  { %v2796_v61 = vsel %vm243_vm1, %v4075_v19, %v4074_v48  ;;  %v778_v55 = vmul.f32 %v711_v36, %v2403_v18  ;;  %v795_v21 = vmul.f32 %v2467_v22, %v2419_v39  ;;  %v709_v3 = vsel %vm243_vm1, %v683_v26, %v684_v58 }
 0x104   :  { %v758_v35 = vsel %vm308_vm2, %v3976_v57, %v731_v38  ;;  %v779_v44 = vmul.f32 %v710_v28, %v2403_v18  ;;  %v733_v8 = vrot.slane %v2484_v27, 1  ;;  %1911 = vrcp.f32 %v479_v60 }
 0x105   :  { %v481_v53 = vadd.f32 1.0, %v2730_v45  ;;  %v421_v56 = vadd.f32 %v405_v25, %v388_v33  ;;  %v757_v36 = vsel %vm308_vm2, %v731_v38, %v732_v32  ;;  %1913 = vrcp.f32 %v480_v40  ;;  %v1908_v43 = vpop.eup %1907 }
 0x106   :  { %v422_v48 = vadd.f32 %v406_v52, %v389_v15  ;;  %v796_v26 = vmul.f32 %v2495_v11, %v2419_v39  ;;  %v685_v19 = vrot.slane %v2484_v27, 7  ;;  %v810_v57 = vadd.f32 %v794_v5, %v778_v55 }
 0x107   :  { %v780_v28 = vmul.f32 %v709_v3, %v2403_v18  ;;  %v826_v51 = vmul.f32 %v758_v35, %v2422_v16  ;;  %v1839_v60 = vmul.f32 -1.442695, %v855_v6  ;;  %v482_v45 = vadd.f32 1.0, %v2740_v31 }
 0x108   :  { %v811_v33 = vadd.f32 %v795_v21, %v779_v44  ;;  %v827_v25 = vmul.f32 %v757_v36, %v2422_v16  ;;  %v756_v38 = vsel %vm308_vm2, %v732_v32, %v733_v8  ;;  %1915 = vrcp.f32 %v481_v53 }
 0x109   :  { %v4076_v40 = vrot.slane %v2397_v4, 7  ;;  %v4077_v15 = vrot.slane %v2389_v9, 7  ;;  %v1806_v5 = vmul.f32 -1.442695, %v421_v56  ;;  %v686_v55 = vrot.slane %v2537_v0, 7 }
 0x10a   :  { %v483_v6 = vadd.f32 1.0, %v1908_v43  ;;  %v1807_v3 = vmul.f32 -1.442695, %v422_v48  ;;  %v734_v31 = vrot.slane %v2537_v0, 1  ;;  %v708_v21 = vsel %vm243_vm1, %v684_v58, %v685_v19  ;;  %v1910_v35 = vpop.eup %1909 }
 0x10b   :  { %v244_v52 = vsel %vm243_vm1, %v4077_v15, %v4076_v40  ;;  %v812_v32 = vadd.f32 %v796_v26, %v780_v28  ;;  %v842_v44 = vadd.f32 %v826_v51, %v810_v57  ;;  %v828_v53 = vmul.f32 %v756_v38, %v2422_v16 }
 0x10c   :  { %1917 = vpow2.f32 %v1839_v60  ;;  %v4078_v36 = vrot.slane %v2323_v7, 1  ;;  %v4079_v56 = vrot.slane %v2397_v4, 1  ;;  %v2848_v48 = vmul.f32 %v2403_v18, %v244_v52 }
 0x10d   :  { %1919 = vrcp.f32 %v482_v45  ;;  %v843_v40 = vadd.f32 %v827_v25, %v811_v33  ;;  %v707_v51 = vsel %vm243_vm1, %v685_v19, %v686_v55  ;;  %v781_v57 = vmul.f32 %v708_v21, %v2403_v18 }
 0x10e   :  { %v2845_v43 = vsel %vm308_vm2, %v4079_v56, %v4078_v36  ;;  %1921 = vpow2.f32 %v1806_v5  ;;  %v797_v58 = vmul.f32 %v2484_v27, %v2419_v39  ;;  %v484_v26 = vadd.f32 1.0, %v1910_v35  ;;  %v2863_v25 = vpop.eup %1911 }
 0x10f   :  { %1923 = vpow2.f32 %v1807_v3  ;;  %v4080_v28 = vrot.slane %v2456_v24, 1  ;;  %v4081_v60 = vrot.slane %v2414_v17, 1  ;;  %v755_v33 = vsel %vm308_vm2, %v733_v8, %v734_v31  ;;  %v2866_v52 = vpop.eup %1913 }
 0x110   :  { %1925 = vrcp.f32 %v483_v6  ;;  %v1826_v19 = vmul.f32 -1.442695, %v842_v44  ;;  %v844_v38 = vadd.f32 %v828_v53, %v812_v32  ;;  %v687_v15 = vrot.slane %v2528_v13, 7 }
 0x111   :  { %v759_v45 = vsel %vm308_vm2, %v4081_v60, %v4080_v28  ;;  %v1827_v5 = vmul.f32 -1.442695, %v843_v40  ;;  %v798_v3 = vmul.f32 %v2537_v0, %v2419_v39  ;;  %v782_v21 = vmul.f32 %v707_v51, %v2403_v18 }
 0x112   :  { %v688_v35 = vrot.slane %v2564_v42, 7  ;;  %v813_v36 = vadd.f32 %v797_v58, %v781_v57  ;;  %v829_v8 = vmul.f32 %v755_v33, %v2422_v16  ;;  %v736_v56 = vrot.slane %v2564_v42, 1  ;;  %v2884_v40 = vpop.eup %1915 }
 0x113   :  { %v735_v6 = vrot.slane %v2528_v13, 1  ;;  %1927 = vrcp.f32 %v484_v26  ;;  %v2877_v32 = vmul.f32 %v2414_v17, %v2419_v39  ;;  %v2880_v44 = vmul.f32 %v759_v45, %v2422_v16 }
 0x114   :  { %v689_v53 = vrot.slane %v2588_v47, 7  ;;  %1929 = vpow2.f32 %v1826_v19  ;;  %v1828_v51 = vmul.f32 -1.442695, %v844_v38  ;;  %v706_v57 = vsel %vm243_vm1, %v686_v55, %v687_v15 }
 0x115   :  { %v690_v58 = vrot.slane %v2654_v1, 7  ;;  %1931 = vpow2.f32 %v1827_v5  ;;  %v814_v26 = vadd.f32 %v798_v3, %v782_v21  ;;  %v800_v28 = vmul.f32 %v2564_v42, %v2419_v39 }
 0x116   :  { %v705_v60 = vsel %vm243_vm1, %v687_v15, %v688_v35  ;;  %v1918_v45 = vpop.eup %1917  ;;  %v845_v33 = vadd.f32 %v829_v8, %v813_v36  ;;  %v753_v4 = vsel %vm308_vm2, %v735_v6, %v736_v56  ;;  %v754_v19 = vsel %vm308_vm2, %v734_v31, %v735_v6 }
 0x117   :  { %v799_v55 = vmul.f32 %v2528_v13, %v2419_v39  ;;  %v2899_v38 = vpop.eup %1919  ;;  %v783_v5 = vmul.f32 %v706_v57, %v2403_v18  ;;  %v738_v3 = vrot.slane %v2654_v1, 1  ;;  %v704_v15 = vsel %vm243_vm1, %v688_v35, %v689_v53 }
 0x118   :  { %v737_v21 = vrot.slane %v2588_v47, 1  ;;  %v2906_v36 = vpop.eup %1921  ;;  %1933 = vpow2.f32 %v1828_v51  ;;  %v784_v8 = vmul.f32 %v705_v60, %v2403_v18  ;;  %v703_v31 = vsel %vm243_vm1, %v689_v53, %v690_v58 }
 0x119   :  { %v691_v6 = vrot.slane %v2643_v59, 7  ;;  %v2912_v9 = vpop.eup %1923  ;;  %v830_v57 = vmul.f32 %v754_v19, %v2422_v16  ;;  %v739_v42 = vrot.slane %v2643_v59, 1  ;;  %v4082_v35 = vrot.slane %v2414_v17, 7 }
 0x11a   :  { %v4083_v13 = vrot.slane %v2647_v37, 7  ;;  %v919_v0 = vadd.f32 1.0, %v1918_v45  ;;  %v2922_v60 = vpop.eup %1925  ;;  %v831_v53 = vmul.f32 %v753_v4, %v2422_v16  ;;  %v802_v7 = vmul.f32 %v2654_v1, %v2419_v39 }
 0x11b   :  { %4084 = vst [vmem:[#allocation36_spill] sm:$0xff] %v2922_v60  ;;  %v785_v27 = vmul.f32 %v704_v15, %v2403_v18  ;;  %v801_v19 = vmul.f32 %v2588_v47, %v2419_v39  ;;  %v815_v22 = vadd.f32 %v799_v55, %v783_v5  ;;  %v751_v37 = vsel %vm308_vm2, %v737_v21, %v738_v3 }
 0x11c   :  { %v712_v51 = vsel %vm243_vm1, %v4083_v13, %v4082_v35  ;;  %v752_v13 = vsel %vm308_vm2, %v736_v56, %v737_v21  ;;  %v786_v45 = vmul.f32 %v703_v31, %v2403_v18  ;;  %v692_v35 = vrot.slane %v2685_v54, 7 }
 0x11d   :  { %v740_v4 = vrot.slane %v2685_v54, 1  ;;  %v702_v1 = vsel %vm243_vm1, %v690_v58, %v691_v6  ;;  %v713_v15 = vsel %vm211_vm4, 0.0, %v712_v51  ;;  %v2941_v47 = vpop.eup %1927  ;;  %v816_v55 = vadd.f32 %v800_v28, %v784_v8 }
 0x11e   :  { %4085 = vst [vmem:[#allocation37_spill] sm:$0xff] %v2941_v47  ;;  %v846_v5 = vadd.f32 %v830_v57, %v814_v26  ;;  %v750_v17 = vsel %vm308_vm2, %v738_v3, %v739_v42  ;;  %1935 = vrcp.f32 %v919_v0  ;;  %v2945_v56 = vpop.eup %1929  ;;  %v817_v21 = vadd.f32 %v801_v19, %v785_v27 }
 0x11f   :  { %v832_v31 = vmul.f32 %v752_v13, %v2422_v16  ;;  %v833_v60 = vmul.f32 %v751_v37, %v2422_v16  ;;  %v260_v58 = vsel %vm211_vm4, 0.0, %v2796_v61  ;;  %v2952_v51 = vpop.eup %1931  ;;  %v818_v47 = vadd.f32 %v802_v7, %v786_v45 }
 0x120   :  { %v787_v26 = vmul.f32 %v702_v1, %v2403_v18  ;;  %v803_v28 = vmul.f32 %v2643_v59, %v2419_v39  ;;  %v777_v0 = vmul.f32 %v713_v15, %v2403_v18  ;;  %v701_v27 = vsel %vm243_vm1, %v691_v6, %v692_v35 }
 0x121   :  { %v749_v37 = vsel %vm308_vm2, %v739_v42, %v740_v4  ;;  %v834_v3 = vmul.f32 %v750_v17, %v2422_v16  ;;  %v741_v61 = vrot.slane %v2618_v63, 1  ;;  %v1829_v8 = vmul.f32 -1.442695, %v845_v33 }
 0x122   :  { %v847_v57 = vadd.f32 %v831_v53, %v815_v22  ;;  %v4086_v7 = vrot.slane %v2618_v63, 7  ;;  %v342_v19 = vmul.f32 %v2403_v18, %v260_v58  ;;  %v1934_v13 = vpop.eup %1933  ;;  %v1830_v45 = vmul.f32 -1.442695, %v846_v5 }
 0x123   :  { %v848_v15 = vadd.f32 %v832_v31, %v816_v55  ;;  %v849_v6 = vadd.f32 %v833_v60, %v817_v21  ;;  %v804_v42 = vmul.f32 %v2685_v54, %v2419_v39  ;;  %v788_v17 = vmul.f32 %v701_v27, %v2403_v18 }
 0x124   :  { %v700_v1 = vsel %vm243_vm1, %v692_v35, %v4086_v7  ;;  %v819_v59 = vadd.f32 %v803_v28, %v787_v26  ;;  %v835_v33 = vmul.f32 %v749_v37, %v2422_v16  ;;  %v809_v22 = vadd.f32 %v2877_v32, %v777_v0 }
 0x125   :  { %v850_v53 = vadd.f32 %v834_v3, %v818_v47  ;;  %v748_v35 = vsel %vm308_vm2, %v740_v4, %v741_v61  ;;  %v789_v58 = vmul.f32 %v700_v1, %v2403_v18  ;;  %v805_v55 = vmul.f32 %v2618_v63, %v2419_v39 }
 0x126   :  { %1937 = vpow2.f32 %v1829_v8  ;;  %v1831_v5 = vmul.f32 -1.442695, %v847_v57  ;;  %v4087_v21 = vrot.slane %v2611_v30, 1  ;;  %v375_v32 = vadd.f32 %v2582_v62, %v342_v19  ;;  %v4130_v30 = vld [vmem:[#allocation23_spill] sm:$0xff] }
 0x127   :  { %v392_v47 = vmul.f32 %v2422_v16, %v2597_v29  ;;  %1939 = vpow2.f32 %v1830_v45  ;;  %v1832_v4 = vmul.f32 -1.442695, %v848_v15  ;;  %v1833_v18 = vmul.f32 -1.442695, %v849_v6 }
 0x128   :  { %v747_v31 = vsel %vm308_vm2, %v741_v61, %v4087_v21  ;;  %v2988_v26 = vpop.eup %1935  ;;  %v820_v39 = vadd.f32 %v804_v42, %v788_v17  ;;  %v836_v28 = vmul.f32 %v748_v35, %v2422_v16  ;;  %v340_v0 = vsel %vm291_vm3, 0.0, %v2845_v43 }
 0x129   :  { %4088 = vst [vmem:[#allocation38_spill] sm:$0xff] %v2988_v26  ;;  %v841_v2 = vadd.f32 %v2880_v44, %v809_v22  ;;  %v851_v27 = vadd.f32 %v835_v33, %v819_v59  ;;  %v1834_v37 = vmul.f32 -1.442695, %v850_v53  ;;  %v821_v62 = vadd.f32 %v805_v55, %v789_v58 }
 0x12a   :  { %v837_v3 = vmul.f32 %v747_v31, %v2422_v16  ;;  %v390_v29 = vadd.f32 %v2801_v49, %v2848_v48  ;;  %v485_v61 = vadd.f32 1.0, %v2906_v36  ;;  %1941 = vpow2.f32 %v1831_v5 }
 0x12b   :  { %v408_v8 = vadd.f32 %v392_v47, %v375_v32  ;;  %v486_v57 = vadd.f32 1.0, %v2912_v9  ;;  %1943 = vpow2.f32 %v1832_v4  ;;  %v407_v20 = vmul.f32 %v2422_v16, %v340_v0 }
 0x12c   :  { %v3005_v59 = vmul.f32 %v2988_v26, %v2695_v50  ;;  %1945 = vpow2.f32 %v1833_v18  ;;  %v852_v44 = vadd.f32 %v836_v28, %v820_v39  ;;  %v1825_v7 = vmul.f32 -1.442695, %v841_v2 }
 0x12d   :  { %1947 = vpow2.f32 %v1834_v37  ;;  %v1835_v49 = vmul.f32 -1.442695, %v851_v27  ;;  %v853_v48 = vadd.f32 %v837_v3, %v821_v62  ;;  %v1793_v36 = vmul.f32 -1.442695, %v408_v8 }
 0x12e   :  { %4089 = vst [vmem:[#allocation39_spill] sm:$0xff] %v3005_v59  ;;  %1949 = vrcp.f32 %v485_v61  ;;  %v906_v9 = vadd.f32 1.0, %v2945_v56  ;;  %v423_v16 = vadd.f32 %v407_v20, %v390_v29  ;;  %v2068_v19 = vmov 0  }
 0x12f   :  { %1951 = vrcp.f32 %v486_v57  ;;  %1875 = vset.pattern.permute.xlu0 %v2068_v19  ;;  %1876 = vset.pattern.permute.xlu1 %v2068_v19  ;;  %v1836_v50 = vmul.f32 -1.442695, %v852_v44  ;;  %v1837_v6 = vmul.f32 -1.442695, %v853_v48  ;;  %v908_v17 = vadd.f32 1.0, %v1934_v13 }
 0x130   :  { %v1938_v45 = vpop.eup %1937  ;;  %1953 = vpow2.f32 %v1825_v7  ;;  %v1808_v22 = vmul.f32 -1.442695, %v423_v16  ;;  %v907_v56 = vadd.f32 1.0, %v2952_v51  ;;  %v1838_v2 = vmul.f32 -1.442695, %v2742_v12 }
 0x131   :  { %v1940_v15 = vpop.eup %1939  ;;  %1955 = vpow2.f32 %v1835_v49  ;;  %v909_v58 = vadd.f32 1.0, %v1938_v45  ;;  %v1840_v37 = vmul.f32 -1.442695, %v2755_v46  ;;  %v474_v12 = vadd.f32 1.0, %v2627_v10 }
 0x132   :  { %1957 = vpow2.f32 %v1793_v36  ;;  %v910_v5 = vadd.f32 1.0, %v1940_v15 }
 0x133   :  { %v2979_v60 = vpop.xlane.xlu0 %164  ;;  %1959 = vrcp.f32 %v906_v9 }
 0x134   :  { %v1942_v53 = vpop.eup %1941  ;;  %1961 = vpow2.f32 %v1836_v50 }
 0x135   :  { %v1944_v35 = vpop.eup %1943  ;;  %1963 = vpow2.f32 %v1837_v6  ;;  %v911_v31 = vadd.f32 1.0, %v1942_v53  ;;  %v3060_v53 = vmul.f32 %v2664_v41, %v2664_v41 }
 0x136   :  { %v1946_v55 = vpop.eup %1945  ;;  %1965 = vrcp.f32 %v908_v17  ;;  %v912_v47 = vadd.f32 1.0, %v1944_v35  ;;  %v954_v17 = vmul.f32 %v2636_v14, %v2331_v23  ;;  %v4101_v35 = vld [vmem:[#allocation33_spill] sm:$0xff]  ;;  %v4102_v23 = vld [vmem:[#allocation34_spill] sm:$0xff] }
 0x137   :  { %v3001_v43 = vpop.xlane.xlu0 %170  ;;  %v3007_v1 = vpop.xlane.xlu1 %167  ;;  %1967 = vpow2.f32 %v1808_v22  ;;  %v913_v51 = vadd.f32 1.0, %v1946_v55  ;;  %v3072_v55 = vmul.f32 %v4102_v23, %v4102_v23 }
 0x138   :  { %v1948_v21 = vpop.eup %1947  ;;  %1969 = vrcp.f32 %v907_v56 }
 0x139   :  { %v3017_v13 = vpop.eup %1949  ;;  %1971 = vrcp.f32 %v909_v58  ;;  %v914_v28 = vadd.f32 1.0, %v1948_v21  ;;  %v3068_v58 = vmul.f32 %v4101_v35, %v4101_v35 }
 0x13a   :  { %4090 = vst [vmem:[#allocation40_spill] sm:$0xff] %v3017_v13  ;;  %v3021_v18 = vpop.eup %1951  ;;  %1973 = vrcp.f32 %v910_v5 }
 0x13b   :  { %v3010_v42 = vpop.xlane.xlu0 %176  ;;  %v3012_v33 = vpop.xlane.xlu1 %173  ;;  %4091 = vst [vmem:[#allocation41_spill] sm:$0xff] %v3021_v18  ;;  %1975 = vrcp.f32 %v911_v31 }
 0x13c   :  { %v1954_v39 = vpop.eup %1953  ;;  %1977 = vrcp.f32 %v912_v47  ;;  %v4103_v47 = vld [vmem:[#allocation35_spill] sm:$0xff] }
 0x13d   :  { %v1956_v0 = vpop.eup %1955  ;;  %1979 = vrcp.f32 %v913_v51  ;;  %v905_v3 = vadd.f32 1.0, %v1954_v39  ;;  %v3078_v51 = vmul.f32 %v4103_v47, %v4103_v47 }
 0x13e   :  { %v1958_v27 = vpop.eup %1957  ;;  %v915_v8 = vadd.f32 1.0, %v1956_v0  ;;  %1981 = vrcp.f32 %v914_v28  ;;  %v3082_v0 = vmul.f32 %v2863_v25, %v2863_v25 }
 0x13f   :  { %v3015_v32 = vpop.xlane.xlu0 %182  ;;  %v3019_v4 = vpop.xlane.xlu1 %179  ;;  %1983 = vpow2.f32 %v1838_v2  ;;  %v472_v44 = vadd.f32 1.0, %v1958_v27  ;;  %v3086_v2 = vmul.f32 %v2866_v52, %v2866_v52  ;;  %v3090_v27 = vmul.f32 %v2884_v40, %v2884_v40 }
 0x140   :  { %v3025_v62 = vpop.eup %1959  ;;  %1985 = vpow2.f32 %v1840_v37  ;;  %4104 = vst [vmem:[#allocation51_spill] sm:$0xff] %v3082_v0  ;;  %v4133_v0 = vld [vmem:[#allocation22_spill] sm:$0xff] }
 0x141   :  { %4092 = vst [vmem:[#allocation42_spill] sm:$0xff] %v3025_v62  ;;  %v1962_v61 = vpop.eup %1961  ;;  %1987 = vrcp.f32 %v905_v3  ;;  %v970_v19 = vmul.f32 %v3025_v62, %v2456_v24  ;;  %v3056_v24 = vmul.f32 %v2636_v14, %v2636_v14  ;;  %4105 = vst [vmem:[#allocation52_spill] sm:$0xff] %v3086_v2  ;;  %v1146_v3 = vmul.f32 %v954_v17, %v954_v17 }
 0x142   :  { %v1964_v20 = vpop.eup %1963  ;;  %v916_v49 = vadd.f32 1.0, %v1962_v61  ;;  %1989 = vrcp.f32 %v915_v8  ;;  %4106 = vst [vmem:[#allocation53_spill] sm:$0xff] %v3090_v27  ;;  %v3096_v8 = vmul.f32 %v2899_v38, %v2899_v38 }
 0x143   :  { %v3027_v29 = vpop.xlane.xlu0 %188  ;;  %v3029_v57 = vpop.xlane.xlu1 %185  ;;  %v917_v36 = vadd.f32 1.0, %v1964_v20  ;;  %1991 = vrcp.f32 %v472_v44  ;;  %v1002_v5 = vadd.f32 %v970_v19, %v954_v17  ;;  %v1178_v21 = vmul.f32 %v970_v19, %v970_v19  ;;  %v4110_v44 = vld [vmem:[#allocation20_spill] sm:$0xff]  ;;  %v4115_v17 = vld [vmem:[#allocation37_spill] sm:$0xff] }
 0x144   :  { %4093 = vst [vmem:[#allocation43_spill] sm:$0xff] %v3027_v29  ;;  %4094 = vst [vmem:[#allocation44_spill] sm:$0xff] %v3029_v57  ;;  %v3031_v7 = vpop.eup %1965  ;;  %1993 = vrcp.f32 %v474_v12 }
 0x145   :  { %4095 = vst [vmem:[#allocation45_spill] sm:$0xff] %v3031_v7  ;;  %v1968_v46 = vpop.eup %1967  ;;  %v972_v15 = vmul.f32 %v3031_v7, %v2495_v11  ;;  %1995 = vrcp.f32 %v916_v49  ;;  %v956_v11 = vmul.f32 %v2664_v41, %v2338_v34  ;;  %4108 = vst [vmem:[#allocation55_spill] sm:$0xff] %v3096_v8  ;;  %v4111_v49 = vld [vmem:[#allocation21_spill] sm:$0xff]  ;;  %v3114_v26 = vmul.f32 0.5, %v1002_v5 }
 0x146   :  { %v3034_v48 = vpop.eup %1969  ;;  %v487_v50 = vadd.f32 1.0, %v1968_v46  ;;  %1997 = vrcp.f32 %v917_v36  ;;  %v3130_v5 = vmul.f32 %v3021_v18, %v3021_v18  ;;  %v4129_v41 = vld [vmem:[#allocation5_spill] sm:$0xff] }
 0x147   :  { %4096 = vst [vmem:[#allocation46_spill] sm:$0xff] %v3034_v48  ;;  %v3036_v9 = vpop.eup %1971  ;;  %v3038_v16 = vpop.xlane.xlu0 %194  ;;  %v1004_v34 = vadd.f32 %v972_v15, %v956_v11  ;;  %v1180_v39 = vmul.f32 %v972_v15, %v972_v15  ;;  %v971_v12 = vmul.f32 %v3034_v48, %v4110_v44  ;;  %v1148_v46 = vmul.f32 %v956_v11, %v956_v11 }
 0x148   :  { %4097 = vst [vmem:[#allocation47_spill] sm:$0xff] %v3036_v9  ;;  %4098 = vst [vmem:[#allocation48_spill] sm:$0xff] %v3038_v16  ;;  %v3042_v45 = vpop.eup %1973  ;;  %v3044_v10 = vpop.xlane.xlu1 %191  ;;  %1999 = vrcp.f32 %v487_v50  ;;  %v973_v36 = vmul.f32 %v3036_v9, %v4111_v49  ;;  %v4113_v50 = vld [vmem:[#allocation36_spill] sm:$0xff]  ;;  %v4120_v49 = vld [vmem:[#allocation7_spill] sm:$0xff] }
 0x149   :  { %4099 = vst [vmem:[#allocation49_spill] sm:$0xff] %v3042_v45  ;;  %4100 = vst [vmem:[#allocation50_spill] sm:$0xff] %v3044_v10  ;;  %v3048_v6 = vpop.eup %1975  ;;  %v3108_v15 = vmul.f32 %v4113_v50, %v4113_v50  ;;  %v3118_v11 = vmul.f32 0.5, %v1004_v34  ;;  %v1196_v16 = vadd.f32 %v1180_v39, %v1148_v46  ;;  %v957_v59 = vmul.f32 %v4101_v35, %v4120_v49 }
 0x14a   :  { %v3052_v22 = vpop.eup %1977  ;;  %4117 = vst [vmem:[#allocation37_spill] sm:$0xff] %v3114_v26  ;;  %4122 = vst [vmem:[#allocation59_spill] sm:$0xff] %v3130_v5  ;;  %v3138_v34 = vmul.f32 %v3034_v48, %v3034_v48  ;;  %v1179_v49 = vmul.f32 %v971_v12, %v971_v12  ;;  %v3156_v48 = vmul.f32 %v3031_v7, %v3031_v7 }
 0x14b   :  { %v3064_v56 = vpop.eup %1979  ;;  %v3092_v37 = vpop.xlane.xlu0 %200  ;;  %4114 = vst [vmem:[#allocation21_spill] sm:$0xff] %v3108_v15  ;;  %4119 = vst [vmem:[#allocation58_spill] sm:$0xff] %v3118_v11  ;;  %v3126_v15 = vmul.f32 %v3017_v13, %v3017_v13  ;;  %v3168_v18 = vmul.f32 0.5, %v1196_v16  ;;  %v1181_v13 = vmul.f32 %v973_v36, %v973_v36  ;;  %v1149_v29 = vmul.f32 %v957_v59, %v957_v59 }
 0x14c   :  { %v3074_v31 = vpop.eup %1981  ;;  %4107 = vst [vmem:[#allocation54_spill] sm:$0xff] %v3092_v37  ;;  %v3098_v20 = vpop.xlane.xlu1 %197  ;;  %v3112_v37 = vmul.f32 %v4115_v17, %v4115_v17 }
 0x14d   :  { %v1984_v28 = vpop.eup %1983  ;;  %4109 = vst [vmem:[#allocation56_spill] sm:$0xff] %v3098_v20  ;;  %v1194_v20 = vadd.f32 %v1178_v21, %v1146_v3  ;;  %4121 = vst [vmem:[#allocation7_spill] sm:$0xff] %v3126_v15  ;;  %v3134_v21 = vmul.f32 %v3025_v62, %v3025_v62  ;;  %v4124_v3 = vld [vmem:[#allocation19_spill] sm:$0xff]  ;;  %v1005_v15 = vadd.f32 %v973_v36, %v957_v59 }
 0x14e   :  { %v1986_v61 = vpop.eup %1985  ;;  %4116 = vst [vmem:[#allocation36_spill] sm:$0xff] %v3112_v37  ;;  %v918_v44 = vadd.f32 1.0, %v1984_v28  ;;  %v3152_v62 = vmul.f32 %v3114_v26, %v3114_v26  ;;  %v3172_v26 = vmul.f32 %v3118_v11, %v3118_v11 }
 0x14f   :  { %v3104_v19 = vpop.eup %1987  ;;  %v920_v28 = vadd.f32 1.0, %v1986_v61  ;;  %v3146_v35 = vpop.xlane.xlu0 %206  ;;  %v3148_v5 = vmul.f32 0.5, %v1194_v20  ;;  %v3160_v61 = vmul.f32 %v3036_v9, %v3036_v9  ;;  %v3184_v14 = vmul.f32 0.5, %v1005_v15 }
 0x150   :  { %4112 = vst [vmem:[#allocation20_spill] sm:$0xff] %v3104_v19  ;;  %v3116_v8 = vpop.eup %1989  ;;  %v969_v46 = vmul.f32 %v3104_v19, %v4124_v3  ;;  %4125 = vst [vmem:[#allocation19_spill] sm:$0xff] %v3146_v35  ;;  %2001 = vrcp.f32 %v918_v44  ;;  %v3164_v10 = vpop.xlane.xlu1 %203  ;;  %v4128_v35 = vld [vmem:[#allocation6_spill] sm:$0xff]  ;;  %v974_v44 = vmul.f32 %v3042_v45, %v4130_v30  ;;  %v1081_v30 = vmul.f32 %v3104_v19, %v3104_v19 }
 0x151   :  { %4118 = vst [vmem:[#allocation57_spill] sm:$0xff] %v3116_v8  ;;  %v3122_v27 = vpop.eup %1991  ;;  %4127 = vst [vmem:[#allocation62_spill] sm:$0xff] %v3164_v10  ;;  %2003 = vrcp.f32 %v920_v28  ;;  %v975_v28 = vmul.f32 %v3048_v6, %v4133_v0 }
 0x152   :  { %v3140_v39 = vpop.eup %1993  ;;  %v953_v20 = vmul.f32 %v3122_v27, %v4128_v35  ;;  %v1033_v7 = vmul.f32 %v3122_v27, %v3122_v27  ;;  %v1177_v35 = vmul.f32 %v969_v46, %v969_v46  ;;  %4131 = vst [vmem:[#allocation6_spill] sm:$0xff] %v3184_v14 }
 0x153   :  { %4123 = vst [vmem:[#allocation60_spill] sm:$0xff] %v3140_v39  ;;  %v3144_v37 = vpop.eup %1995  ;;  %v955_v9 = vmul.f32 %v3140_v39, %v4129_v41  ;;  %v1035_v16 = vmul.f32 %v3140_v39, %v3140_v39  ;;  %v635_v15 = vpop.xlane.xlu0 %634 }
 0x154   :  { %v3162_v3 = vpop.eup %1997  ;;  %v1049_v11 = vmul.f32 %v1033_v7, %v2979_v60  ;;  %v1001_v36 = vadd.f32 %v969_v46, %v953_v20  ;;  %v1145_v63 = vmul.f32 %v953_v20, %v953_v20  ;;  %v1197_v60 = vadd.f32 %v1181_v13, %v1149_v29  ;;  %v3197_v59 = vpop.xlane.xlu1 %209  ;;  %v4136_v20 = vld [vmem:[#allocation9_spill] sm:$0xff] }
 0x155   :  { %4126 = vst [vmem:[#allocation61_spill] sm:$0xff] %v3162_v3  ;;  %v3180_v10 = vpop.eup %1999  ;;  %v1003_v2 = vadd.f32 %v971_v12, %v955_v9  ;;  %v4132_v3 = vld [vmem:[#allocation8_spill] sm:$0xff]  ;;  %v1147_v57 = vmul.f32 %v955_v9, %v955_v9  ;;  %4135 = vst [vmem:[#allocation23_spill] sm:$0xff] %v3197_v59  ;;  %v1097_v12 = vmul.f32 %v1081_v30, %v635_v15 }
 0x156   :  { %v958_v41 = vmul.f32 %v4102_v23, %v4132_v3  ;;  %v3195_v39 = vmul.f32 %v3180_v10, %v3180_v10  ;;  %v1193_v3 = vadd.f32 %v1177_v35, %v1145_v63  ;;  %v3201_v46 = vmul.f32 %v3184_v14, %v3184_v14 }
 0x157   :  { %v959_v19 = vmul.f32 %v4103_v47, %v4136_v20  ;;  %v3205_v0 = vmul.f32 0.5, %v1003_v2  ;;  %v1195_v23 = vadd.f32 %v1179_v49, %v1147_v57  ;;  %v1182_v13 = vmul.f32 %v974_v44, %v974_v44 }
 0x158   :  { %4134 = vst [vmem:[#allocation5_spill] sm:$0xff] %v3195_v39  ;;  %v1006_v7 = vadd.f32 %v974_v44, %v958_v41  ;;  %v3209_v39 = vmul.f32 %v3042_v45, %v3042_v45  ;;  %v1051_v29 = vmul.f32 %v1035_v16, %v3001_v43  ;;  %v3212_v9 = vmul.f32 0.5, %v1001_v36  ;;  %v4140_v45 = vld [vmem:[#allocation24_spill] sm:$0xff] }
 0x159   :  { %4137 = vst [vmem:[#allocation8_spill] sm:$0xff] %v3205_v0  ;;  %v1113_v63 = vadd.f32 %v1097_v12, %v1049_v11  ;;  %v1183_v35 = vmul.f32 %v975_v28, %v975_v28  ;;  %v3214_v30 = vmul.f32 0.5, %v1197_v60  ;;  %v1150_v14 = vmul.f32 %v958_v41, %v958_v41  ;;  %v638_v60 = vpop.xlane.xlu1 %637 }
 0x15a   :  { %4138 = vst [vmem:[#allocation22_spill] sm:$0xff] %v3212_v9  ;;  %v3216_v15 = vmul.f32 0.5, %v1006_v7  ;;  %v1007_v20 = vadd.f32 %v975_v28, %v959_v19  ;;  %v3218_v2 = vpop.eup %2001  ;;  %v1209_v49 = vmul.f32 0.5, %v1193_v3  ;;  %v1151_v59 = vmul.f32 %v959_v19, %v959_v19  ;;  %v4142_v7 = vld [vmem:[#allocation11_spill] sm:$0xff] }
 0x15b   :  { %v1129_v57 = vmul.f32 0.0078125, %v1113_v63  ;;  %v976_v44 = vmul.f32 %v3052_v22, %v4140_v45  ;;  %v1211_v47 = vmul.f32 0.5, %v1195_v23  ;;  %v1243_v43 = vmul.f32 %v3205_v0, %v3205_v0  ;;  %v3228_v36 = vpop.eup %2003  ;;  %v641_v63 = vpop.xlane.xlu0 %640  ;;  %v4144_v0 = vld [vmem:[#allocation25_spill] sm:$0xff] }
 0x15c   :  { %4139 = vst [vmem:[#allocation9_spill] sm:$0xff] %v3216_v15  ;;  %v1198_v11 = vadd.f32 %v1182_v13, %v1150_v14  ;;  %v3226_v16 = vmul.f32 %v3048_v6, %v3048_v6  ;;  %4141 = vst [vmem:[#allocation24_spill] sm:$0xff] %v3228_v36  ;;  %v1241_v28 = vmul.f32 %v3212_v9, %v3212_v9  ;;  %v3241_v3 = vmul.f32 0.5, %v1007_v20 }
 0x15d   :  { %v1225_v41 = vadd.f32 %v1209_v49, %v1129_v57  ;;  %v1199_v19 = vadd.f32 %v1183_v35, %v1151_v59  ;;  %v960_v45 = vmul.f32 %v2863_v25, %v4142_v7  ;;  %v1050_v23 = vmul.f32 %v3056_v24, %v3007_v1  ;;  %v4145_v1 = vld [vmem:[#allocation10_spill] sm:$0xff] }
 0x15e   :  { %v1098_v14 = vmul.f32 %v3134_v21, %v638_v60  ;;  %v3239_v12 = vmul.f32 %v3216_v15, %v3216_v15  ;;  %4143 = vst [vmem:[#allocation11_spill] sm:$0xff] %v3241_v3  ;;  %v1184_v49 = vmul.f32 %v976_v44, %v976_v44  ;;  %v977_v59 = vmul.f32 %v3064_v56, %v4144_v0 }
 0x15f   :  { %v1257_v13 = vsub.f32 %v1225_v41, %v1241_v28  ;;  %v1008_v57 = vadd.f32 %v976_v44, %v960_v45  ;;  %v1099_v7 = vmul.f32 %v3138_v34, %v641_v63  ;;  %v3246_v9 = vmul.f32 0.5, %v1198_v11 }
 0x160   :  { %v1114_v35 = vadd.f32 %v1098_v14, %v1050_v23  ;;  %v961_v24 = vmul.f32 %v2866_v52, %v4145_v1  ;;  %v3250_v60 = vmul.f32 0.5, %v1199_v19  ;;  %v3254_v20 = vmul.f32 %v3052_v22, %v3052_v22 }
 0x161   :  { %v1273_v21 = vmax.f32 %v1257_v13, 0.0  ;;  %v1152_v41 = vmul.f32 %v960_v45, %v960_v45  ;;  %v1115_v28 = vadd.f32 %v1099_v7, %v1051_v29  ;;  %v3258_v0 = vmul.f32 %v3241_v3, %v3241_v3  ;;  %v644_v29 = vpop.xlane.xlu1 %643  ;;  %v4147_v3 = vld [vmem:[#allocation31_spill] sm:$0xff] }
 0x162   :  { %v1130_v44 = vmul.f32 0.0078125, %v1114_v35  ;;  %v3262_v34 = vmul.f32 %v3064_v56, %v3064_v56  ;;  %v3264_v23 = vmul.f32 0.5, %v1008_v57  ;;  %v1009_v14 = vadd.f32 %v977_v59, %v961_v24  ;;  %v647_v35 = vpop.xlane.xlu0 %646 }
 0x163   :  { %v1289_v11 = vadd.f32 1e-05, %v1273_v21  ;;  %v1200_v19 = vadd.f32 %v1184_v49, %v1152_v41  ;;  %v1052_v13 = vmul.f32 %v3060_v53, %v3012_v33  ;;  %v1131_v63 = vmul.f32 0.0078125, %v1115_v28 }
 0x164   :  { %4146 = vst [vmem:[#allocation25_spill] sm:$0xff] %v3264_v23  ;;  %v1226_v45 = vadd.f32 %v3148_v5, %v1130_v44  ;;  %v1153_v7 = vmul.f32 %v961_v24, %v961_v24  ;;  %v1053_v1 = vmul.f32 %v3068_v58, %v3010_v42  ;;  %v1100_v15 = vmul.f32 %v3156_v48, %v644_v29  ;;  %v4148_v44 = vld [vmem:[#allocation13_spill] sm:$0xff] }
 0x165   :  { %2005 = vrsqrt.f32 %v1289_v11  ;;  %v1101_v57 = vmul.f32 %v3160_v61, %v647_v35  ;;  %v1227_v21 = vadd.f32 %v1211_v47, %v1131_v63  ;;  %v1185_v41 = vmul.f32 %v977_v59, %v977_v59 }
 0x166   :  { %v1258_v49 = vsub.f32 %v1226_v45, %v3152_v62  ;;  %v978_v33 = vmul.f32 %v3074_v31, %v4147_v3  ;;  %v1116_v53 = vadd.f32 %v1100_v15, %v1052_v13  ;;  %v962_v24 = vmul.f32 %v2884_v40, %v4148_v44  ;;  %v4150_v15 = vld [vmem:[#allocation12_spill] sm:$0xff]  ;;  %v4153_v44 = vld [vmem:[#allocation14_spill] sm:$0xff] }
 0x167   :  { %v1117_v5 = vadd.f32 %v1101_v57, %v1053_v1  ;;  %v3280_v42 = vmul.f32 %v3074_v31, %v3074_v31  ;;  %v1259_v48 = vsub.f32 %v1227_v21, %v1243_v43  ;;  %v3282_v28 = vmul.f32 0.5, %v1200_v19  ;;  %v4151_v57 = vld [vmem:[#allocation29_spill] sm:$0xff] }
 0x168   :  { %v1274_v58 = vmax.f32 %v1258_v49, 0.0  ;;  %v3284_v61 = vmul.f32 0.5, %v1009_v14  ;;  %v1132_v62 = vmul.f32 0.0078125, %v1116_v53  ;;  %v3288_v3 = vmul.f32 %v3264_v23, %v3264_v23 }
 0x169   :  { %v1133_v47 = vmul.f32 0.0078125, %v1117_v5  ;;  %v963_v59 = vmul.f32 %v2899_v38, %v4150_v15  ;;  %v1275_v13 = vmax.f32 %v1259_v48, 0.0  ;;  %v1010_v45 = vadd.f32 %v978_v33, %v962_v24 }
 0x16a   :  { %4149 = vst [vmem:[#allocation10_spill] sm:$0xff] %v3284_v61  ;;  %v1290_v11 = vadd.f32 1e-05, %v1274_v58  ;;  %v1186_v63 = vmul.f32 %v978_v33, %v978_v33  ;;  %v1228_v29 = vadd.f32 %v3168_v18, %v1132_v62  ;;  %v1201_v19 = vadd.f32 %v1185_v41, %v1153_v7  ;;  %v1321_v7 = vld [vmem:[%s3946_s2] sm:$0xff]  ;;  %v650_v41 = vpop.xlane.xlu1 %649 }
 0x16b   :  { %v1229_v43 = vadd.f32 %v3214_v30, %v1133_v47  ;;  %v1154_v14 = vmul.f32 %v962_v24, %v962_v24  ;;  %v1291_v35 = vadd.f32 1e-05, %v1275_v13  ;;  %v3296_v1 = vmul.f32 %v3284_v61, %v3284_v61  ;;  %v653_v47 = vpop.xlane.xlu0 %652  ;;  %v4184_v61 = vld [vmem:[#allocation54_spill] sm:$0xff] }
 0x16c   :  { %2007 = vrsqrt.f32 %v1290_v11  ;;  %v979_v49 = vmul.f32 %v3116_v8, %v4151_v57  ;;  %v1260_v21 = vsub.f32 %v1228_v29, %v3172_v26  ;;  %v3304_v18 = vmul.f32 %v3116_v8, %v3116_v8 }
 0x16d   :  { %v1261_v53 = vsub.f32 %v1229_v43, %v3201_v46  ;;  %v1155_v30 = vmul.f32 %v963_v59, %v963_v59  ;;  %2009 = vrsqrt.f32 %v1291_v35  ;;  %v3309_v33 = vmul.f32 0.5, %v1010_v45 }
 0x16e   :  { %v1202_v5 = vadd.f32 %v1186_v63, %v1154_v14  ;;  %v964_v24 = vmul.f32 %v4113_v50, %v4153_v44  ;;  %v1054_v46 = vmul.f32 %v3072_v55, %v3019_v4  ;;  %v1276_v58 = vmax.f32 %v1260_v21, 0.0  ;;  %v4156_v44 = vld [vmem:[#allocation44_spill] sm:$0xff] }
 0x16f   :  { %4152 = vst [vmem:[#allocation31_spill] sm:$0xff] %v3309_v33  ;;  %v2006_v26 = vpop.eup %2005  ;;  %v1277_v48 = vmax.f32 %v1261_v53, 0.0  ;;  %v1102_v62 = vmul.f32 %v3209_v39, %v650_v41  ;;  %v1055_v15 = vmul.f32 %v3078_v51, %v3015_v32  ;;  %v1103_v11 = vmul.f32 %v3226_v16, %v653_v47  ;;  %v4159_v47 = vld [vmem:[#allocation61_spill] sm:$0xff] }
 0x170   :  { %v1011_v13 = vadd.f32 %v979_v49, %v963_v59  ;;  %v3319_v45 = vmul.f32 %v2006_v26, %v1321_v7  ;;  %v1292_v63 = vadd.f32 1e-05, %v1276_v58  ;;  %v1187_v14 = vmul.f32 %v979_v49, %v979_v49  ;;  %v656_v49 = vpop.xlane.xlu1 %655  ;;  %v4155_v7 = vld [vmem:[#allocation15_spill] sm:$0xff] }
 0x171   :  { %v1293_v29 = vadd.f32 1e-05, %v1277_v48  ;;  %v1118_v43 = vadd.f32 %v1102_v62, %v1054_v46  ;;  %v1119_v35 = vadd.f32 %v1103_v11, %v1055_v15  ;;  %v3321_v57 = vmul.f32 0.5, %v1201_v19  ;;  %v4157_v26 = vld [vmem:[#allocation51_spill] sm:$0xff] }
 0x172   :  { %v980_v4 = vmul.f32 %v3144_v37, %v2685_v54  ;;  %v1401_v55 = vmul.f32 %v3122_v27, %v3319_v45  ;;  %2011 = vrsqrt.f32 %v1292_v63  ;;  %v3327_v51 = vmul.f32 0.5, %v1202_v5  ;;  %v1322_v54 = vld [vmem:[%s3946_s2 + $0x8] sm:$0xff]  ;;  %v4158_v62 = vld [vmem:[#allocation27_spill] sm:$0xff] }
 0x173   :  { %v1134_v32 = vmul.f32 0.0078125, %v1118_v43  ;;  %v3331_v39 = vmul.f32 %v3144_v37, %v3144_v37  ;;  %2013 = vrsqrt.f32 %v1293_v29  ;;  %v1135_v16 = vmul.f32 0.0078125, %v1119_v35  ;;  %v4160_v43 = vld [vmem:[#allocation43_spill] sm:$0xff] }
 0x174   :  { %v3335_v59 = vmul.f32 %v3309_v33, %v3309_v33  ;;  %v1156_v19 = vmul.f32 %v964_v24, %v964_v24  ;;  %1419 = vperm.xlu0 %1875, %v1401_v55   ;;  %v3341_v21 = vmul.f32 0.5, %v1011_v13  ;;  %v1203_v53 = vadd.f32 %v1187_v14, %v1155_v30  ;;  %v4161_v14 = vld [vmem:[#allocation52_spill] sm:$0xff]  ;;  %v659_v55 = vpop.xlane.xlu0 %658 }
 0x175   :  { %v1230_v27 = vadd.f32 %v3246_v9, %v1134_v32  ;;  %v965_v41 = vmul.f32 %v4115_v17, %v4155_v7  ;;  %v1056_v46 = vmul.f32 %v4157_v26, %v4156_v44  ;;  %v1231_v58 = vadd.f32 %v3250_v60, %v1135_v16  ;;  %v1323_v9 = vld [vmem:[%s3946_s2 + $0x10] sm:$0xff] }
 0x176   :  { %4154 = vst [vmem:[#allocation13_spill] sm:$0xff] %v3341_v21  ;;  %v2008_v5 = vpop.eup %2007  ;;  %v1104_v48 = vmul.f32 %v3254_v20, %v656_v49  ;;  %v981_v15 = vmul.f32 %v4159_v47, %v4158_v62  ;;  %v1012_v11 = vadd.f32 %v980_v4, %v964_v24  ;;  %v1188_v13 = vmul.f32 %v980_v4, %v980_v4 }
 0x177   :  { %v1262_v30 = vsub.f32 %v1230_v27, %v3239_v12  ;;  %v3355_v63 = vmul.f32 %v2008_v5, %v1322_v54  ;;  %v2010_v29 = vpop.eup %2009  ;;  %v1057_v35 = vmul.f32 %v4161_v14, %v4160_v43  ;;  %v1263_v60 = vsub.f32 %v1231_v58, %v3258_v0  ;;  %v4162_v12 = vld [vmem:[#allocation28_spill] sm:$0xff] }
 0x178   :  { %v1120_v20 = vadd.f32 %v1104_v48, %v1056_v46  ;;  %v3362_v32 = vmul.f32 %v4159_v47, %v4159_v47  ;;  %v1105_v49 = vmul.f32 %v3262_v34, %v659_v55  ;;  %v3367_v4 = vmul.f32 %v2010_v29, %v1323_v9  ;;  %v4163_v46 = vld [vmem:[#allocation26_spill] sm:$0xff]  ;;  %v1324_v34 = vld [vmem:[%s3946_s2 + $0x18] sm:$0xff] }
 0x179   :  { %v1278_v16 = vmax.f32 %v1262_v30, 0.0  ;;  %v1402_v24 = vmul.f32 %v4162_v12, %v3355_v63  ;;  %v1279_v54 = vmax.f32 %v1263_v60, 0.0  ;;  %v3369_v7 = vmul.f32 0.5, %v1203_v53  ;;  %v4165_v43 = vld [vmem:[#allocation16_spill] sm:$0xff] }
 0x17a   :  { %v1136_v27 = vmul.f32 0.0078125, %v1120_v20  ;;  %v1013_v5 = vadd.f32 %v981_v15, %v965_v41  ;;  %v1121_v44 = vadd.f32 %v1105_v49, %v1057_v35  ;;  %v1189_v26 = vmul.f32 %v981_v15, %v981_v15  ;;  %v4166_v14 = vld [vmem:[#allocation40_spill] sm:$0xff] }
 0x17b   :  { %v1294_v0 = vadd.f32 1e-05, %v1278_v16  ;;  %v982_v58 = vmul.f32 %v3218_v2, %v4163_v46  ;;  %1424 = vperm.xlu1 %1876, %v1402_v24   ;;  %v1295_v48 = vadd.f32 1e-05, %v1279_v54  ;;  %v3377_v9 = vmul.f32 0.5, %v1012_v11  ;;  %v4167_v35 = vld [vmem:[#allocation60_spill] sm:$0xff] }
 0x17c   :  { %v1232_v62 = vadd.f32 %v3282_v28, %v1136_v27  ;;  %v1157_v30 = vmul.f32 %v965_v41, %v965_v41  ;;  %v2012_v53 = vpop.eup %2011  ;;  %v1137_v29 = vmul.f32 0.0078125, %v1121_v44  ;;  %v966_v15 = vmul.f32 %v4166_v14, %v4165_v43  ;;  %v1325_v28 = vld [vmem:[%s3946_s2 + $0x20] sm:$0xff] }
 0x17d   :  { %4164 = vst [vmem:[#allocation12_spill] sm:$0xff] %v3377_v9  ;;  %2015 = vrsqrt.f32 %v1294_v0  ;;  %v1403_v60 = vmul.f32 %v4167_v35, %v3367_v4  ;;  %v2014_v20 = vpop.eup %2013  ;;  %v1204_v16 = vadd.f32 %v1188_v13, %v1156_v19  ;;  %v3384_v49 = vmul.f32 %v2012_v53, %v1324_v34 }
 0x17e   :  { %2017 = vrsqrt.f32 %v1295_v48  ;;  %v1264_v55 = vsub.f32 %v1232_v62, %v3288_v3  ;;  %v1233_v41 = vadd.f32 %v3321_v57, %v1137_v29  ;;  %v3390_v11 = vmul.f32 0.5, %v1013_v5  ;;  %v4169_v5 = vld [vmem:[#allocation32_spill] sm:$0xff]  ;;  %v4170_v48 = vld [vmem:[#allocation17_spill] sm:$0xff] }
 0x17f   :  { %v1205_v12 = vadd.f32 %v1189_v26, %v1157_v30  ;;  %v1190_v24 = vmul.f32 %v982_v58, %v982_v58  ;;  %1429 = vperm.xlu1 %1876, %v1403_v60   ;;  %v3394_v27 = vmul.f32 %v3341_v21, %v3341_v21  ;;  %v3398_v3 = vmul.f32 %v3377_v9, %v3377_v9  ;;  %v4171_v62 = vld [vmem:[#allocation41_spill] sm:$0xff]  ;;  %v662_v29 = vpop.xlane.xlu1 %661  ;;  %v4172_v60 = vld [vmem:[#allocation50_spill] sm:$0xff] }
 0x180   :  { %4168 = vst [vmem:[#allocation29_spill] sm:$0xff] %v3390_v11  ;;  %v1280_v54 = vmax.f32 %v1264_v55, 0.0  ;;  %v3402_v19 = vmul.f32 %v3218_v2, %v3218_v2  ;;  %v1265_v57 = vsub.f32 %v1233_v41, %v3296_v1  ;;  %v1158_v13 = vmul.f32 %v966_v15, %v966_v15  ;;  %v4175_v41 = vld [vmem:[#allocation48_spill] sm:$0xff] }
 0x181   :  { %v1404_v0 = vmul.f32 %v4169_v5, %v3384_v49  ;;  %v3407_v44 = vmul.f32 %v2014_v20, %v1325_v28  ;;  %v3409_v46 = vmul.f32 0.5, %v1204_v16  ;;  %v1014_v34 = vadd.f32 %v982_v58, %v966_v15  ;;  %v4173_v20 = vld [vmem:[#allocation53_spill] sm:$0xff]  ;;  %v665_v58 = vpop.xlane.xlu0 %664  ;;  %v4174_v15 = vld [vmem:[#allocation39_spill] sm:$0xff] }
 0x182   :  { %v1296_v26 = vadd.f32 1e-05, %v1280_v54  ;;  %v967_v30 = vmul.f32 %v4171_v62, %v4170_v48  ;;  %v1281_v53 = vmax.f32 %v1265_v57, 0.0  ;;  %v3413_v43 = vmul.f32 0.5, %v1205_v12  ;;  %v4176_v54 = vld [vmem:[#allocation55_spill] sm:$0xff]  ;;  %v4177_v48 = vld [vmem:[#allocation33_spill] sm:$0xff] }
 0x183   :  { %v3417_v1 = vmul.f32 %v3390_v11, %v3390_v11  ;;  %v1206_v35 = vadd.f32 %v1190_v24, %v1158_v13  ;;  %1434 = vperm.xlu1 %1876, %v1404_v0   ;;  %v1058_v55 = vmul.f32 %v4173_v20, %v4172_v60  ;;  %v1106_v16 = vmul.f32 %v3280_v42, %v662_v29  ;;  %v1326_v24 = vld [vmem:[%s3946_s2 + $0x28] sm:$0xff] }
 0x184   :  { %2019 = vrsqrt.f32 %v1296_v26  ;;  %v1015_v28 = vadd.f32 %v4174_v15, %v967_v30  ;;  %v1059_v57 = vmul.f32 %v4176_v54, %v4175_v41  ;;  %v1297_v12 = vadd.f32 1e-05, %v1281_v53  ;;  %v4178_v42 = vld [vmem:[#allocation38_spill] sm:$0xff]  ;;  %v1327_v53 = vld [vmem:[%s3946_s2 + $0x30] sm:$0xff]  ;;  %v668_v33 = vpop.xlane.xlu1 %667 }
 0x185   :  { %v1107_v5 = vmul.f32 %v3304_v18, %v665_v58  ;;  %v1405_v9 = vmul.f32 %v4177_v48, %v3407_v44  ;;  %v1122_v13 = vadd.f32 %v1106_v16, %v1058_v55  ;;  %v3431_v0 = vmul.f32 0.5, %v1014_v34  ;;  %v4179_v58 = vld [vmem:[#allocation30_spill] sm:$0xff] }
 0x186   :  { %v1095_v26 = vmul.f32 %v4178_v42, %v4178_v42  ;;  %v1159_v29 = vmul.f32 %v967_v30, %v967_v30  ;;  %2021 = vrsqrt.f32 %v1297_v12  ;;  %v1191_v20 = vmul.f32 %v4174_v15, %v4174_v15  ;;  %v4180_v54 = vld [vmem:[#allocation18_spill] sm:$0xff]  ;;  %v4181_v12 = vld [vmem:[#allocation56_spill] sm:$0xff] }
 0x187   :  { %v2016_v60 = vpop.eup %2015  ;;  %v1123_v18 = vadd.f32 %v1107_v5, %v1059_v57  ;;  %v984_v41 = vmul.f32 %v3228_v36, %v4179_v58  ;;  %1439 = vperm.xlu1 %1876, %v1405_v9   ;;  %v1138_v55 = vmul.f32 0.0078125, %v1122_v13  ;;  %v1222_v16 = vmul.f32 0.5, %v1206_v35  ;;  %v4182_v5 = vld [vmem:[#allocation21_spill] sm:$0xff]  ;;  %v4183_v58 = vld [vmem:[#allocation34_spill] sm:$0xff] }
 0x188   :  { %v2018_v34 = vpop.eup %2017  ;;  %v968_v30 = vmul.f32 %v3180_v10, %v4180_v54  ;;  %v3444_v48 = vmul.f32 %v2016_v60, %v1326_v24  ;;  %v3446_v21 = vmul.f32 0.5, %v1015_v28  ;;  %v1096_v57 = vmul.f32 %v3228_v36, %v3228_v36  ;;  %v4185_v36 = vld [vmem:[#allocation36_spill] sm:$0xff] }
 0x189   :  { %v1139_v11 = vmul.f32 0.0078125, %v1123_v18  ;;  %v3450_v15 = vmul.f32 %v2018_v34, %v1327_v53  ;;  %v1060_v9 = vmul.f32 %v4182_v5, %v4181_v12  ;;  %v1234_v13 = vadd.f32 %v3327_v51, %v1138_v55  ;;  %v671_v18 = vpop.xlane.xlu0 %670  ;;  %v4186_v51 = vld [vmem:[#allocation62_spill] sm:$0xff] }
 0x18a   :  { %v1108_v35 = vmul.f32 %v3331_v39, %v668_v33  ;;  %v1406_v24 = vmul.f32 %v4183_v58, %v3444_v48  ;;  %v1207_v28 = vadd.f32 %v1191_v20, %v1159_v29  ;;  %v1016_v54 = vadd.f32 %v984_v41, %v968_v30  ;;  %v1328_v33 = vld [vmem:[%s3946_s2 + $0x38] sm:$0xff]  ;;  %v4187_v39 = vld [vmem:[#allocation7_spill] sm:$0xff]  ;;  %v674_v29 = vpop.xlane.xlu1 %673 }
 0x18b   :  { %v1235_v60 = vadd.f32 %v3369_v7, %v1139_v11  ;;  %v1192_v23 = vmul.f32 %v984_v41, %v984_v41  ;;  %v1061_v53 = vmul.f32 %v4185_v36, %v4184_v61  ;;  %v1266_v34 = vsub.f32 %v1234_v13, %v3335_v59  ;;  %v4188_v41 = vld [vmem:[#allocation35_spill] sm:$0xff] }
 0x18c   :  { %v1124_v8 = vadd.f32 %v1108_v35, %v1060_v9  ;;  %v1109_v12 = vmul.f32 %v3362_v32, %v671_v18  ;;  %1444 = vperm.xlu1 %1876, %v1406_v24   ;;  %v1062_v7 = vmul.f32 %v4187_v39, %v4186_v51  ;;  %v1160_v20 = vmul.f32 %v968_v30, %v968_v30  ;;  %v4189_v9 = vld [vmem:[#allocation19_spill] sm:$0xff] }
 0x18d   :  { %v1267_v11 = vsub.f32 %v1235_v60, %v3394_v27  ;;  %v1407_v36 = vmul.f32 %v4188_v41, %v3450_v15  ;;  %v1282_v59 = vmax.f32 %v1266_v34, 0.0  ;;  %v1110_v32 = vmul.f32 %v3402_v19, %v674_v29  ;;  %v4190_v13 = vld [vmem:[#allocation59_spill] sm:$0xff]  ;;  %v677_v24 = vpop.xlane.xlu0 %676  ;;  %v4192_v34 = vld [vmem:[#allocation5_spill] sm:$0xff] }
 0x18e   :  { %v2020_v61 = vpop.eup %2019  ;;  %v1140_v55 = vmul.f32 0.0078125, %v1124_v8  ;;  %v1125_v5 = vadd.f32 %v1109_v12, %v1061_v53  ;;  %v1063_v35 = vmul.f32 %v4190_v13, %v4189_v9  ;;  %v1208_v18 = vadd.f32 %v1192_v23, %v1160_v20  ;;  %v1329_v8 = vld [vmem:[%s3946_s2 + $0x40] sm:$0xff]  ;;  %v4191_v19 = vld [vmem:[#allocation23_spill] sm:$0xff]  ;;  %v680_v41 = vpop.xlane.xlu1 %679 }
 0x18f   :  { %v1283_v58 = vmax.f32 %v1267_v11, 0.0  ;;  %v3474_v51 = vmul.f32 %v2020_v61, %v1328_v33  ;;  %v1298_v27 = vadd.f32 1e-05, %v1282_v59  ;;  %v1126_v39 = vadd.f32 %v1110_v32, %v1062_v7 }
 0x190   :  { %v1236_v30 = vadd.f32 %v3409_v46, %v1140_v55  ;;  %v1141_v60 = vmul.f32 0.0078125, %v1125_v5  ;;  %1449 = vperm.xlu1 %1876, %v1407_v36   ;;  %v2022_v53 = vpop.eup %2021  ;;  %v1064_v12 = vmul.f32 %v4192_v34, %v4191_v19  ;;  %v1111_v11 = vmul.f32 %v1095_v26, %v677_v24 }
 0x191   :  { %v1299_v29 = vadd.f32 1e-05, %v1283_v58  ;;  %v1408_v23 = vmul.f32 %v2863_v25, %v3474_v51  ;;  %2023 = vrsqrt.f32 %v1298_v27  ;;  %v1142_v7 = vmul.f32 0.0078125, %v1126_v39 }
 0x192   :  { %v1268_v46 = vsub.f32 %v1236_v30, %v3398_v3  ;;  %v1237_v33 = vadd.f32 %v3413_v43, %v1141_v60  ;;  %v1127_v20 = vadd.f32 %v1111_v11, %v1063_v35  ;;  %v1112_v36 = vmul.f32 %v1096_v57, %v680_v41 }
 0x193   :  { %2025 = vrsqrt.f32 %v1299_v29  ;;  %v3486_v61 = vmul.f32 %v2022_v53, %v1329_v8  ;;  %v1238_v5 = vadd.f32 %v1222_v16, %v1142_v7  ;;  %v1254_v26 = vmul.f32 %v3431_v0, %v3431_v0 }
 0x194   :  { %v1284_v59 = vmax.f32 %v1268_v46, 0.0  ;;  %v1269_v55 = vsub.f32 %v1237_v33, %v3417_v1  ;;  %1454 = vperm.xlu1 %1876, %v1408_v23   ;;  %v1143_v25 = vmul.f32 0.0078125, %v1127_v20  ;;  %v1223_v32 = vmul.f32 0.5, %v1207_v28  ;;  %v1332_v33 = vld [vmem:[%s3946_s2 + $0x58] sm:$0xff] }
 0x195   :  { %v3491_v9 = vmul.f32 0.5, %v1016_v54  ;;  %v1128_v3 = vadd.f32 %v1112_v36, %v1064_v12  ;;  %v1270_v58 = vsub.f32 %v1238_v5, %v1254_v26  ;;  %v1409_v57 = vmul.f32 %v2866_v52, %v3486_v61  ;;  %v1330_v52 = vld [vmem:[%s3946_s2 + $0x48] sm:$0xff]  ;;  %v1333_v36 = vld [vmem:[%s3946_s2 + $0x60] sm:$0xff] }
 0x196   :  { %v1300_v43 = vadd.f32 1e-05, %v1284_v59  ;;  %v1285_v13 = vmax.f32 %v1269_v55, 0.0  ;;  %v1239_v35 = vadd.f32 %v1223_v32, %v1143_v25  ;;  %v1255_v1 = vmul.f32 %v3446_v21, %v3446_v21 }
 0x197   :  { %v1144_v16 = vmul.f32 0.0078125, %v1128_v3  ;;  %v1224_v24 = vmul.f32 0.5, %v1208_v18  ;;  %v1286_v30 = vmax.f32 %v1270_v58, 0.0  ;;  %v1256_v60 = vmul.f32 %v3491_v9, %v3491_v9  ;;  %v1331_v18 = vld [vmem:[%s3946_s2 + $0x50] sm:$0xff] }
 0x198   :  { %2027 = vrsqrt.f32 %v1300_v43  ;;  %v1301_v27 = vadd.f32 1e-05, %v1285_v13  ;;  %1459 = vperm.xlu1 %1876, %v1409_v57   ;;  %v1271_v28 = vsub.f32 %v1239_v35, %v1255_v1  ;;  %v1335_v43 = vld [vmem:[%s3946_s2 + $0x70] sm:$0xff] }
 0x199   :  { %v1240_v54 = vadd.f32 %v1224_v24, %v1144_v16  ;;  %v1302_v39 = vadd.f32 1e-05, %v1286_v30  ;;  %v4193_v24 = vld [vmem:[#allocation42_spill] sm:$0xff] }
 0x19a   :  { %2029 = vrsqrt.f32 %v1301_v27  ;;  %v1287_v8 = vmax.f32 %v1271_v28, 0.0  ;;  %v4194_v27 = vld [vmem:[#allocation20_spill] sm:$0xff]  ;;  %v4195_v28 = vld [vmem:[#allocation45_spill] sm:$0xff] }
 0x19b   :  { %v1272_v53 = vsub.f32 %v1240_v54, %v1256_v60  ;;  %v2024_v19 = vpop.eup %2023  ;;  %2031 = vrsqrt.f32 %v1302_v39  ;;  %v1641_v30 = vmul.f32 %v4194_v27, %v3319_v45  ;;  %v1644_v54 = vmul.f32 %v4195_v28, %v3384_v49  ;;  %v4198_v39 = vld [vmem:[#allocation47_spill] sm:$0xff] }
 0x19c   :  { %v1303_v12 = vadd.f32 1e-05, %v1287_v8  ;;  %v3505_v11 = vmul.f32 %v2024_v19, %v1330_v52  ;;  %v1645_v52 = vmul.f32 %v4198_v39, %v3407_v44  ;;  %v1648_v8 = vmul.f32 %v3052_v22, %v3474_v51  ;;  %v4210_v28 = vld [vmem:[#allocation31_spill] sm:$0xff]  ;;  %v4212_v39 = vld [vmem:[#allocation12_spill] sm:$0xff] }
 0x19d   :  { %v2026_v34 = vpop.eup %2025  ;;  %v1288_v29 = vmax.f32 %v1272_v53, 0.0  ;;  %v1647_v53 = vmul.f32 %v3048_v6, %v3450_v15  ;;  %v1649_v19 = vmul.f32 %v3064_v56, %v3486_v61  ;;  %v1353_v6 = vld [vmem:[%s3947_s3] sm:$0xff] }
 0x19e   :  { %v3507_v41 = vmul.f32 %v2026_v34, %v1331_v18  ;;  %2033 = vrsqrt.f32 %v1303_v12  ;;  %v1410_v46 = vmul.f32 %v2884_v40, %v3505_v11  ;;  %v1334_v40 = vld [vmem:[%s3946_s2 + $0x68] sm:$0xff]  ;;  %v1650_v18 = vmul.f32 %v3074_v31, %v3505_v11  ;;  %v4199_v34 = vld [vmem:[#allocation57_spill] sm:$0xff] }
 0x19f   :  { %v1304_v23 = vadd.f32 1e-05, %v1288_v29  ;;  %v4200_v29 = vld [vmem:[#allocation22_spill] sm:$0xff] }
 0x1a0   :  { %v1411_v7 = vmul.f32 %v2899_v38, %v3507_v41  ;;  %1464 = vperm.xlu0 %1875, %v1410_v46   ;;  %v1651_v12 = vmul.f32 %v4199_v34, %v3507_v41  ;;  %v1369_v22 = vmul.f32 %v3319_v45, %v4200_v29  ;;  %v1355_v46 = vld [vmem:[%s3947_s3 + $0x10] sm:$0xff]  ;;  %v1354_v45 = vld [vmem:[%s3947_s3 + $0x8] sm:$0xff] }
 0x1a1   :  { %2035 = vrsqrt.f32 %v1304_v23  ;;  %v4201_v23 = vld [vmem:[#allocation8_spill] sm:$0xff] }
 0x1a2   :  { %v2028_v20 = vpop.eup %2027  ;;  %1469 = vperm.xlu1 %1876, %v1411_v7   ;;  %v1385_v31 = vsub.f32 %v1353_v6, %v1369_v22  ;;  %v1371_v56 = vmul.f32 %v3367_v4, %v4201_v23 }
 0x1a3   :  { %v3519_v59 = vmul.f32 %v2028_v20, %v1332_v33  ;;  %v4202_v33 = vld [vmem:[#allocation37_spill] sm:$0xff] }
 0x1a4   :  { %v2030_v55 = vpop.eup %2029  ;;  %v1370_v7 = vmul.f32 %v3355_v63, %v4202_v33  ;;  %v1387_v20 = vsub.f32 %v1355_v46, %v1371_v56 }
 0x1a5   :  { %v1412_v5 = vmul.f32 %v4113_v50, %v3519_v59  ;;  %v3526_v26 = vmul.f32 %v2030_v55, %v1333_v36  ;;  %v1652_v38 = vmul.f32 %v3144_v37, %v3519_v59  ;;  %v2032_v25 = vpop.eup %2031  ;;  %v1336_v37 = vld [vmem:[%s3946_s2 + $0x78] sm:$0xff]  ;;  %v4203_v36 = vld [vmem:[#allocation6_spill] sm:$0xff] }
 0x1a6   :  { %v3530_v32 = vmul.f32 %v2032_v25, %v1334_v40  ;;  %v1373_v55 = vmul.f32 %v3407_v44, %v4203_v36  ;;  %v1386_v40 = vsub.f32 %v1354_v45, %v1370_v7  ;;  %v1359_v44 = vld [vmem:[%s3947_s3 + $0x30] sm:$0xff] }
 0x1a7   :  { %1474 = vperm.xlu0 %1875, %v1412_v5   ;;  %v1413_v3 = vmul.f32 %v4115_v17, %v3526_v26  ;;  %v1653_v13 = vmul.f32 %v4159_v47, %v3526_v26  ;;  %v4204_v5 = vld [vmem:[#allocation58_spill] sm:$0xff] }
 0x1a8   :  { %v2034_v50 = vpop.eup %2033  ;;  %v1414_v58 = vmul.f32 %v4166_v14, %v3530_v32  ;;  %v1654_v57 = vmul.f32 %v3218_v2, %v3530_v32  ;;  %v1642_v2 = vmul.f32 %v4193_v24, %v3355_v63  ;;  %v1356_v63 = vld [vmem:[%s3947_s3 + $0x18] sm:$0xff] }
 0x1a9   :  { %1479 = vperm.xlu1 %1876, %v1413_v3   ;;  %v3546_v17 = vmul.f32 %v2034_v50, %v1335_v43  ;;  %v4205_v3 = vld [vmem:[#allocation11_spill] sm:$0xff]  ;;  %v4206_v50 = vld [vmem:[#allocation9_spill] sm:$0xff] }
 0x1aa   :  { %v1375_v43 = vmul.f32 %v3450_v15, %v4205_v3  ;;  %v1361_v15 = vld [vmem:[%s3947_s3 + $0x40] sm:$0xff] }
 0x1ab   :  { %v2036_v35 = vpop.eup %2035  ;;  %1484 = vperm.xlu0 %1875, %v1414_v58   ;;  %v1415_v47 = vmul.f32 %v4171_v62, %v3546_v17  ;;  %v1655_v14 = vmul.f32 %v4178_v42, %v3546_v17  ;;  %v4196_v62 = vld [vmem:[#allocation46_spill] sm:$0xff]  ;;  %v1374_v58 = vmul.f32 %v3444_v48, %v4206_v50 }
 0x1ac   :  { %v3548_v1 = vmul.f32 %v2036_v35, %v1336_v37  ;;  %v1643_v60 = vmul.f32 %v4196_v62, %v3367_v4  ;;  %v1357_v4 = vld [vmem:[%s3947_s3 + $0x20] sm:$0xff]  ;;  %v1391_v37 = vsub.f32 %v1359_v44, %v1375_v43 }
 0x1ad   :  { %1489 = vperm.xlu1 %1876, %v1415_v47   ;;  %v1389_v25 = vsub.f32 %v1357_v4, %v1373_v55 }
 0x1ae   :  { %v1416_v16 = vmul.f32 %v3180_v10, %v3548_v1  ;;  %v4197_v10 = vld [vmem:[#allocation49_spill] sm:$0xff]  ;;  %v1384_v29 = vmul.f32 %v3548_v1, %v3491_v9 }
 0x1af   :  { %v1646_v42 = vmul.f32 %v4197_v10, %v3444_v48  ;;  %v1360_v48 = vld [vmem:[%s3947_s3 + $0x38] sm:$0xff] }
 0x1b0   :  { %1494 = vperm.xlu0 %1875, %v1416_v16  }
 0x1b1   :  { %1664 = vperm.xlu1 %1876, %v1642_v2   ;;  %v4209_v2 = vld [vmem:[#allocation13_spill] sm:$0xff] }
 0x1b2   :  { %v1379_v27 = vmul.f32 %v3507_v41, %v4209_v2  ;;  %v1365_v41 = vld [vmem:[%s3947_s3 + $0x60] sm:$0xff] }
 0x1b4   :  { %1659 = vperm.xlu0 %1875, %v1641_v30  }
 0x1b5   :  { %1674 = vperm.xlu1 %1876, %v1644_v54   ;;  %v1378_v54 = vmul.f32 %v3505_v11, %v4210_v28  ;;  %v1364_v11 = vld [vmem:[%s3947_s3 + $0x58] sm:$0xff]  ;;  %v2038_v28 = vld [vmem:[%s3945_s1 + $0x10] sm:$0xff] }
 0x1b8   :  { %1669 = vperm.xlu0 %1875, %v1643_v60   ;;  %v4211_v60 = vld [vmem:[#allocation29_spill] sm:$0xff] }
 0x1b9   :  { %1684 = vperm.xlu1 %1876, %v1646_v42   ;;  %v1381_v10 = vmul.f32 %v3526_v26, %v4211_v60  ;;  %v1367_v26 = vld [vmem:[%s3947_s3 + $0x70] sm:$0xff] }
 0x1bc   :  { %1679 = vperm.xlu0 %1875, %v1645_v52   ;;  %v1380_v52 = vmul.f32 %v3519_v59, %v4212_v39  ;;  %v1366_v59 = vld [vmem:[%s3947_s3 + $0x68] sm:$0xff] }
 0x1bd   :  { %1694 = vperm.xlu1 %1876, %v1648_v8   ;;  %v1397_v8 = vsub.f32 %v1365_v41, %v1381_v10  ;;  %v2039_v10 = vld [vmem:[%s3945_s1 + $0x8] sm:$0xff] }
 0x1c0   :  { %1689 = vperm.xlu0 %1875, %v1647_v53   ;;  %v1383_v53 = vmul.f32 %v3546_v17, %v3446_v21  ;;  %v1368_v21 = vld [vmem:[%s3947_s3 + $0x78] sm:$0xff] }
 0x1c1   :  { %1704 = vperm.xlu1 %1876, %v1650_v18   ;;  %v1396_v18 = vsub.f32 %v1364_v11, %v1380_v52  ;;  %v4213_v17 = vld [vmem:[#allocation24_spill] sm:$0xff] }
 0x1c2   :  { %v1399_v34 = vsub.f32 %v1367_v26, %v1383_v53  ;;  %v1844_v11 = vld [vmem:[%s3945_s1 + $0x98] sm:$0xff]  ;;  %v2040_v53 = vld [vmem:[%s3945_s1 + $0x20] sm:$0xff] }
 0x1c4   :  { %1699 = vperm.xlu0 %1875, %v1649_v19   ;;  %v1382_v19 = vmul.f32 %v3530_v32, %v3431_v0  ;;  %v1656_v0 = vmul.f32 %v4213_v17, %v3548_v1  ;;  %v1400_v32 = vsub.f32 %v1368_v21, %v1384_v29  ;;  %v2041_v29 = vld [vmem:[%s3945_s1 + $0x18] sm:$0xff] }
 0x1c5   :  { %1714 = vperm.xlu1 %1876, %v1652_v38   ;;  %v1372_v38 = vmul.f32 %v3384_v49, %v4204_v5  ;;  %v1358_v49 = vld [vmem:[%s3947_s3 + $0x28] sm:$0xff] }
 0x1c6   :  { %v1390_v47 = vsub.f32 %v1358_v49, %v1374_v58 }
 0x1c8   :  { %1709 = vperm.xlu0 %1875, %v1651_v12   ;;  %v1398_v12 = vsub.f32 %v1366_v59, %v1382_v19 }
 0x1c9   :  { %1724 = vperm.xlu1 %1876, %v1654_v57   ;;  %v4207_v57 = vld [vmem:[#allocation10_spill] sm:$0xff] }
 0x1ca   :  { %v1377_v35 = vmul.f32 %v3486_v61, %v4207_v57  ;;  %v1363_v61 = vld [vmem:[%s3947_s3 + $0x50] sm:$0xff]  ;;  %v1841_v57 = vld [vmem:[%s3945_s1 + $0x80] sm:$0xff] }
 0x1cb   :  { %v1395_v62 = vsub.f32 %v1363_v61, %v1379_v27  ;;  %v1842_v61 = vld [vmem:[%s3945_s1 + $0x88] sm:$0xff] }
 0x1cc   :  { %1719 = vperm.xlu0 %1875, %v1653_v13   ;;  %v1388_v13 = vsub.f32 %v1356_v63, %v1372_v38  ;;  %v1393_v24 = vsub.f32 %v1361_v15, %v1377_v35 }
 0x1cd   :  { %1515 = vperm.xlu1 %1876, %v1385_v31  }
 0x1d0   :  { %1729 = vperm.xlu0 %1875, %v1655_v14   ;;  %v4208_v14 = vld [vmem:[#allocation25_spill] sm:$0xff] }
 0x1d1   :  { %1525 = vperm.xlu1 %1876, %v1387_v20   ;;  %v1376_v16 = vmul.f32 %v3474_v51, %v4208_v14  ;;  %v1362_v51 = vld [vmem:[%s3947_s3 + $0x48] sm:$0xff] }
 0x1d2   :  { %v1394_v42 = vsub.f32 %v1362_v51, %v1378_v54 }
 0x1d3   :  { %v1392_v30 = vsub.f32 %v1360_v48, %v1376_v16  ;;  %v1843_v48 = vld [vmem:[%s3945_s1 + $0x90] sm:$0xff] }
 0x1d4   :  { %1520 = vperm.xlu0 %1875, %v1386_v40  }
 0x1d5   :  { %1535 = vperm.xlu1 %1876, %v1389_v25  }
 0x1d8   :  { %1530 = vperm.xlu0 %1875, %v1388_v13  }
 0x1d9   :  { %1545 = vperm.xlu1 %1876, %v1391_v37  }
 0x1dc   :  { %1540 = vperm.xlu0 %1875, %v1390_v47   ;;  %v2037_v47 = vld [vmem:[%s3945_s1] sm:$0xff] }
 0x1dd   :  { %1555 = vperm.xlu1 %1876, %v1393_v24  }
 0x1e0   :  { %1550 = vperm.xlu0 %1875, %v1392_v30  }
 0x1e1   :  { %1565 = vperm.xlu1 %1876, %v1395_v62   ;;  %v1845_v62 = vld [vmem:[%s3945_s1 + $0xa0] sm:$0xff] }
 0x1e4   :  { %1560 = vperm.xlu0 %1875, %v1394_v42  }
 0x1e5   :  { %1575 = vperm.xlu1 %1876, %v1397_v8  }
 0x1e8   :  { %1570 = vperm.xlu0 %1875, %v1396_v18  }
 0x1e9   :  { %1585 = vperm.xlu1 %1876, %v1399_v34   ;;  %v1847_v34 = vld [vmem:[%s3945_s1 + $0xb0] sm:$0xff] }
 0x1ec   :  { %1580 = vperm.xlu0 %1875, %v1398_v12  }
 0x1ed   :  { %1734 = vperm.xlu1 %1876, %v1656_v0  }
 0x1f0   :  { %1590 = vperm.xlu0 %1875, %v1400_v32  }
 0x1f3   :  { %v1420_v33 = vpop.permute.xlu0 %1419 }
 0x1f4   :  { %v1497_v14 = vmul.f32 %v2037_v47, %v1420_v33 }
 0x1fa   :  { %v1425_v22 = vpop.permute.xlu1 %1424 }
 0x1fb   :  { %v1498_v41 = vmul.f32 %v2039_v10, %v1425_v22  ;;  %v1846_v22 = vld [vmem:[%s3945_s1 + $0xa8] sm:$0xff] }
 0x1fe   :  { %v1430_v6 = vpop.permute.xlu1 %1429 }
 0x1ff   :  { %v1499_v54 = vmul.f32 %v2038_v28, %v1430_v6 }
 0x202   :  { %v1435_v31 = vpop.permute.xlu1 %1434 }
 0x203   :  { %v1500_v21 = vmul.f32 %v2041_v29, %v1435_v31  ;;  %v2042_v31 = vld [vmem:[%s3945_s1 + $0x30] sm:$0xff] }
 0x206   :  { %v1440_v23 = vpop.permute.xlu1 %1439 }
 0x207   :  { %v1501_v26 = vmul.f32 %v2040_v53, %v1440_v23 }
 0x20b   :  { %v3660_v56 = vpop.permute.xlu1 %1444 }
 0x20f   :  { %v3662_v46 = vpop.permute.xlu1 %1449 }
 0x210   :  { %v1503_v23 = vmul.f32 %v2042_v31, %v3662_v46  ;;  %v2043_v46 = vld [vmem:[%s3945_s1 + $0x28] sm:$0xff] }
 0x213   :  { %v3664_v9 = vpop.permute.xlu1 %1454 }
 0x217   :  { %v3666_v7 = vpop.permute.xlu1 %1459 }
 0x21f   :  { %v3668_v45 = vpop.permute.xlu0 %1464 }
 0x221   :  { %v3670_v20 = vpop.permute.xlu1 %1469 }
 0x226   :  { %v3672_v1 = vpop.permute.xlu0 %1474 }
 0x228   :  { %v3674_v36 = vpop.permute.xlu1 %1479 }
 0x22a   :  { %v3676_v55 = vpop.permute.xlu0 %1484 }
 0x22c   :  { %v3678_v4 = vpop.permute.xlu1 %1489 }
 0x22f   :  { %v3680_v40 = vpop.permute.xlu0 %1494 }
 0x230   :  { %v1665_v5 = vpop.permute.xlu1 %1664 }
 0x231   :  { %v1738_v42 = vmul.f32 %v1842_v61, %v1665_v5 }
 0x233   :  { %v1660_v38 = vpop.permute.xlu0 %1659 }
 0x234   :  { %v1675_v63 = vpop.permute.xlu1 %1674  ;;  %v1737_v16 = vmul.f32 %v1841_v57, %v1660_v38 }
 0x235   :  { %v1740_v17 = vmul.f32 %v1844_v11, %v1675_v63  ;;  %v1849_v63 = vld [vmem:[%s3945_s1 + $0xc0] sm:$0xff] }
 0x237   :  { %v1670_v25 = vpop.permute.xlu0 %1669 }
 0x238   :  { %v3682_v3 = vpop.permute.xlu1 %1684  ;;  %v1739_v51 = vmul.f32 %v1843_v48, %v1670_v25 }
 0x23b   :  { %v1680_v43 = vpop.permute.xlu0 %1679 }
 0x23c   :  { %v3684_v44 = vpop.permute.xlu1 %1694  ;;  %v1741_v18 = vmul.f32 %v1845_v62, %v1680_v43  ;;  %v1502_v43 = vmul.f32 %v2043_v46, %v3660_v56  ;;  %v2044_v56 = vld [vmem:[%s3945_s1 + $0x40] sm:$0xff]  ;;  %v1850_v62 = vld [vmem:[%s3945_s1 + $0xc8] sm:$0xff]  ;;  %v1856_v46 = vld [vmem:[%s3945_s1 + $0xf8] sm:$0xff] }
 0x23f   :  { %v1690_v13 = vpop.permute.xlu0 %1689 }
 0x240   :  { %v3686_v50 = vpop.permute.xlu1 %1704  ;;  %v1743_v33 = vmul.f32 %v1847_v34, %v1690_v13  ;;  %v1742_v13 = vmul.f32 %v1846_v22, %v3682_v3  ;;  %v1505_v3 = vmul.f32 %v2044_v56, %v3666_v7  ;;  %v2045_v7 = vld [vmem:[%s3945_s1 + $0x38] sm:$0xff] }
 0x241   :  { %v1746_v11 = vmul.f32 %v1850_v62, %v3686_v50 }
 0x243   :  { %v3688_v58 = vpop.permute.xlu0 %1699 }
 0x244   :  { %v3690_v49 = vpop.permute.xlu1 %1714  ;;  %v1745_v48 = vmul.f32 %v1849_v63, %v3688_v58  ;;  %v1504_v58 = vmul.f32 %v2045_v7, %v3664_v9  ;;  %v2046_v9 = vld [vmem:[%s3945_s1 + $0x50] sm:$0xff] }
 0x247   :  { %v3692_v37 = vpop.permute.xlu0 %1709 }
 0x248   :  { %v3697_v35 = vpop.permute.xlu1 %1724 }
 0x24b   :  { %v3699_v15 = vpop.permute.xlu0 %1719 }
 0x24c   :  { %v1516_v24 = vpop.permute.xlu1 %1515 }
 0x24d   :  { %v1593_v2 = vadd.f32 %v1516_v24, %v1497_v14  ;;  %v1753_v27 = vadd.f32 %v1737_v16, %v1516_v24  ;;  %v1848_v14 = vld [vmem:[%s3945_s1 + $0xb8] sm:$0xff] }
 0x24e   :  { %v1744_v28 = vmul.f32 %v1848_v14, %v3684_v44  ;;  %v1507_v44 = vmul.f32 %v2046_v9, %v3670_v20  ;;  %v2047_v20 = vld [vmem:[%s3945_s1 + $0x48] sm:$0xff] }
 0x24f   :  { %v3710_v30 = vpop.permute.xlu0 %1729  ;;  %1609 = vst.msk [vmem:[%s3948_s4] sm:$0xff] %vm66_vm0, %v1593_v2  ;;  %1857 = vst.msk [vmem:[%s3948_s4 + $0x80] sm:$0xff] %vm66_vm0, %v1753_v27  ;;  %v1851_v27 = vld [vmem:[%s3945_s1 + $0xd0] sm:$0xff] }
 0x250   :  { %v1526_v60 = vpop.permute.xlu1 %1525  ;;  %v1747_v10 = vmul.f32 %v1851_v27, %v3692_v37  ;;  %v1506_v37 = vmul.f32 %v2047_v20, %v3668_v45  ;;  %v2048_v45 = vld [vmem:[%s3945_s1 + $0x60] sm:$0xff] }
 0x251   :  { %v1595_v39 = vadd.f32 %v1526_v60, %v1499_v54  ;;  %v1755_v52 = vadd.f32 %v1739_v51, %v1526_v60  ;;  %v1509_v50 = vmul.f32 %v2048_v45, %v3674_v36  ;;  %v2049_v36 = vld [vmem:[%s3945_s1 + $0x58] sm:$0xff] }
 0x253   :  { %v1521_v8 = vpop.permute.xlu0 %1520  ;;  %1611 = vst.msk [vmem:[%s3948_s4 + $0x10] sm:$0xff] %vm66_vm0, %v1595_v39  ;;  %1859 = vst.msk [vmem:[%s3948_s4 + $0x90] sm:$0xff] %vm66_vm0, %v1755_v52  ;;  %v1853_v39 = vld [vmem:[%s3945_s1 + $0xe0] sm:$0xff] }
 0x254   :  { %v1594_v19 = vadd.f32 %v1521_v8, %v1498_v41  ;;  %v1754_v59 = vadd.f32 %v1738_v42, %v1521_v8  ;;  %v1536_v12 = vpop.permute.xlu1 %1535 }
 0x255   :  { %v1597_v0 = vadd.f32 %v1536_v12, %v1501_v26  ;;  %v1757_v32 = vadd.f32 %v1741_v18, %v1536_v12  ;;  %v1852_v26 = vld [vmem:[%s3945_s1 + $0xd8] sm:$0xff]  ;;  %v1855_v12 = vld [vmem:[%s3945_s1 + $0xf0] sm:$0xff] }
 0x256   :  { %1610 = vst.msk [vmem:[%s3948_s4 + $0x8] sm:$0xff] %vm66_vm0, %v1594_v19  ;;  %1858 = vst.msk [vmem:[%s3948_s4 + $0x88] sm:$0xff] %vm66_vm0, %v1754_v59  ;;  %v1749_v19 = vmul.f32 %v1853_v39, %v3699_v15  ;;  %v1508_v15 = vmul.f32 %v2049_v36, %v3672_v1  ;;  %v2050_v1 = vld [vmem:[%s3945_s1 + $0x70] sm:$0xff] }
 0x257   :  { %v1531_v6 = vpop.permute.xlu0 %1530  ;;  %1613 = vst.msk [vmem:[%s3948_s4 + $0x20] sm:$0xff] %vm66_vm0, %v1597_v0  ;;  %1861 = vst.msk [vmem:[%s3948_s4 + $0xa0] sm:$0xff] %vm66_vm0, %v1757_v32  ;;  %v1854_v32 = vld [vmem:[%s3945_s1 + $0xe8] sm:$0xff] }
 0x258   :  { %v1596_v5 = vadd.f32 %v1531_v6, %v1500_v21  ;;  %v1756_v38 = vadd.f32 %v1740_v17, %v1531_v6  ;;  %v1546_v25 = vpop.permute.xlu1 %1545  ;;  %v1748_v21 = vmul.f32 %v1852_v26, %v3690_v49  ;;  %v1511_v49 = vmul.f32 %v2050_v1, %v3678_v4 }
 0x259   :  { %v1599_v57 = vadd.f32 %v1546_v25, %v1503_v23  ;;  %v1759_v47 = vadd.f32 %v1743_v33, %v1546_v25  ;;  %v1751_v6 = vmul.f32 %v1855_v12, %v3710_v30  ;;  %v1750_v30 = vmul.f32 %v1854_v32, %v3697_v35 }
 0x25a   :  { %1612 = vst.msk [vmem:[%s3948_s4 + $0x18] sm:$0xff] %vm66_vm0, %v1596_v5  ;;  %1860 = vst.msk [vmem:[%s3948_s4 + $0x98] sm:$0xff] %vm66_vm0, %v1756_v38  ;;  %v2051_v5 = vld [vmem:[%s3945_s1 + $0x68] sm:$0xff] }
 0x25b   :  { %v1541_v16 = vpop.permute.xlu0 %1540  ;;  %1615 = vst.msk [vmem:[%s3948_s4 + $0x30] sm:$0xff] %vm66_vm0, %v1599_v57  ;;  %1863 = vst.msk [vmem:[%s3948_s4 + $0xb0] sm:$0xff] %vm66_vm0, %v1759_v47  ;;  %v1510_v4 = vmul.f32 %v2051_v5, %v3676_v55 }
 0x25c   :  { %v1598_v24 = vadd.f32 %v1541_v16, %v1502_v43  ;;  %v1758_v2 = vadd.f32 %v1742_v13, %v1541_v16  ;;  %v1556_v61 = vpop.permute.xlu1 %1555  ;;  %v2052_v13 = vld [vmem:[%s3945_s1 + $0x78] sm:$0xff] }
 0x25d   :  { %v1601_v54 = vadd.f32 %v1556_v61, %v1505_v3  ;;  %v1761_v51 = vadd.f32 %v1745_v48, %v1556_v61  ;;  %v1512_v57 = vmul.f32 %v2052_v13, %v3680_v40 }
 0x25e   :  { %1614 = vst.msk [vmem:[%s3948_s4 + $0x28] sm:$0xff] %vm66_vm0, %v1598_v24  ;;  %1862 = vst.msk [vmem:[%s3948_s4 + $0xa8] sm:$0xff] %vm66_vm0, %v1758_v2 }
 0x25f   :  { %v1551_v60 = vpop.permute.xlu0 %1550  ;;  %1617 = vst.msk [vmem:[%s3948_s4 + $0x40] sm:$0xff] %vm66_vm0, %v1601_v54  ;;  %1865 = vst.msk [vmem:[%s3948_s4 + $0xc0] sm:$0xff] %vm66_vm0, %v1761_v51 }
 0x260   :  { %v1600_v41 = vadd.f32 %v1551_v60, %v1504_v58  ;;  %v1760_v42 = vadd.f32 %v1744_v28, %v1551_v60  ;;  %v1566_v52 = vpop.permute.xlu1 %1565 }
 0x261   :  { %v1603_v8 = vadd.f32 %v1566_v52, %v1507_v44  ;;  %v1763_v53 = vadd.f32 %v1747_v10, %v1566_v52 }
 0x262   :  { %1616 = vst.msk [vmem:[%s3948_s4 + $0x38] sm:$0xff] %vm66_vm0, %v1600_v41  ;;  %1864 = vst.msk [vmem:[%s3948_s4 + $0xb8] sm:$0xff] %vm66_vm0, %v1760_v42 }
 0x263   :  { %v1561_v18 = vpop.permute.xlu0 %1560  ;;  %1619 = vst.msk [vmem:[%s3948_s4 + $0x50] sm:$0xff] %vm66_vm0, %v1603_v8  ;;  %1867 = vst.msk [vmem:[%s3948_s4 + $0xd0] sm:$0xff] %vm66_vm0, %v1763_v53 }
 0x264   :  { %v1602_v59 = vadd.f32 %v1561_v18, %v1506_v37  ;;  %v1762_v34 = vadd.f32 %v1746_v11, %v1561_v18  ;;  %v1576_v29 = vpop.permute.xlu1 %1575 }
 0x265   :  { %v1605_v17 = vadd.f32 %v1576_v29, %v1509_v50  ;;  %v1765_v0 = vadd.f32 %v1749_v19, %v1576_v29 }
 0x266   :  { %1618 = vst.msk [vmem:[%s3948_s4 + $0x48] sm:$0xff] %vm66_vm0, %v1602_v59  ;;  %1866 = vst.msk [vmem:[%s3948_s4 + $0xc8] sm:$0xff] %vm66_vm0, %v1762_v34 }
 0x267   :  { %v1571_v22 = vpop.permute.xlu0 %1570  ;;  %1621 = vst.msk [vmem:[%s3948_s4 + $0x60] sm:$0xff] %vm66_vm0, %v1605_v17  ;;  %1869 = vst.msk [vmem:[%s3948_s4 + $0xe0] sm:$0xff] %vm66_vm0, %v1765_v0 }
 0x268   :  { %v1604_v31 = vadd.f32 %v1571_v22, %v1508_v15  ;;  %v1764_v23 = vadd.f32 %v1748_v21, %v1571_v22  ;;  %v1586_v33 = vpop.permute.xlu1 %1585 }
 0x269   :  { %v1607_v38 = vadd.f32 %v1586_v33, %v1511_v49  ;;  %v1767_v63 = vadd.f32 %v1751_v6, %v1586_v33 }
 0x26a   :  { %1620 = vst.msk [vmem:[%s3948_s4 + $0x58] sm:$0xff] %vm66_vm0, %v1604_v31  ;;  %1868 = vst.msk [vmem:[%s3948_s4 + $0xd8] sm:$0xff] %vm66_vm0, %v1764_v23 }
 0x26b   :  { %v1581_v25 = vpop.permute.xlu0 %1580  ;;  %1623 = vst.msk [vmem:[%s3948_s4 + $0x70] sm:$0xff] %vm66_vm0, %v1607_v38  ;;  %1871 = vst.msk [vmem:[%s3948_s4 + $0xf0] sm:$0xff] %vm66_vm0, %v1767_v63 }
 0x26c   :  { %v1606_v55 = vadd.f32 %v1581_v25, %v1510_v4  ;;  %v1766_v43 = vadd.f32 %v1750_v30, %v1581_v25  ;;  %v1735_v35 = vpop.permute.xlu1 %1734 }
 0x26d   :  { %v1752_v47 = vmul.f32 %v1856_v46, %v1735_v35 }
 0x26e   :  { %1622 = vst.msk [vmem:[%s3948_s4 + $0x68] sm:$0xff] %vm66_vm0, %v1606_v55  ;;  %1870 = vst.msk [vmem:[%s3948_s4 + $0xe8] sm:$0xff] %vm66_vm0, %v1766_v43 }
 0x26f   :  { %v1591_v14 = vpop.permute.xlu0 %1590 }
 0x270   :  { %v1608_v16 = vadd.f32 %v1591_v14, %v1512_v57  ;;  %v1768_v56 = vadd.f32 %v1752_v47, %v1591_v14 }
 0x272   :  { %1624 = vst.msk [vmem:[%s3948_s4 + $0x78] sm:$0xff] %vm66_vm0, %v1608_v16  ;;  %1872 = vst.msk [vmem:[%s3948_s4 + $0xf8] sm:$0xff] %vm66_vm0, %v1768_v56 }
 0x273   :  { %1790 = vsyncpa [#allocation3], 1 }

</bundles_post_ra>
